<compile_context>
chip_gen: v6e
topology: v6e:2x2x1
jax: 0.10.0
libtpu: 0.0.40
codegen_flags: <defaults>
</compile_context>

<pallas_src>
import functools
import math

import jax
import jax.numpy as jnp
import numpy as np
from jax.experimental import pallas as pl
from jax.experimental.pallas import tpu as pltpu


def _tmha_kernel(xq_ref, xk_ref, xv_ref, wq_ref, wk_ref, wv_ref, wo_ref,
                 bo_ref, out_ref, *, heads, head_dim, BN, T, C):
    """Temporal multi-head attention over all B*N slabs in one invocation.

    Ref shapes:
      xq_ref/xk_ref/xv_ref : (BN, T, C)
      wq_ref/wk_ref/wv_ref : (C, C)   (1/sqrt(d_k) already folded into Wq)
      wo_ref               : (C, C)
      bo_ref               : (1, C)
      out_ref              : (BN, T, C)
    """
    GT = BN * T

    # Q/K/V projections: three (GT, C) @ (C, C) MXU matmuls.
    q = jnp.dot(xq_ref[...].reshape(GT, C), wq_ref[...],
                preferred_element_type=jnp.float32).reshape(BN, T, C)
    k = jnp.dot(xk_ref[...].reshape(GT, C), wk_ref[...],
                preferred_element_type=jnp.float32).reshape(BN, T, C)
    v = jnp.dot(xv_ref[...].reshape(GT, C), wv_ref[...],
                preferred_element_type=jnp.float32).reshape(BN, T, C)

    # Gather the per-head lane slices and batch attention over (heads * BN):
    # stacking along a new leading axis is layout-trivial (no lane relayout).
    def head_stack(x):
        return jnp.stack(
            [x[:, :, h * head_dim:(h + 1) * head_dim] for h in range(heads)],
            axis=0).reshape(heads * BN, T, head_dim)

    qh = head_stack(q)                              # (heads*BN, T, d_k)
    kh = head_stack(k)
    vh = head_stack(v)

    # One batched scores einsum + one softmax chain + one context einsum.
    s = jnp.einsum('btd,bsd->bts', qh, kh,
                   preferred_element_type=jnp.float32)   # (heads*BN, T, T)
    s = s - jnp.max(s, axis=-1, keepdims=True)
    p = jnp.exp(s)
    inv_denom = pl.reciprocal(jnp.sum(p, axis=-1, keepdims=True),
                              approx=False)              # exact: keeps 1e-5 tol
    ctx = jnp.einsum('bts,bsd->btd', p * inv_denom, vh,
                     preferred_element_type=jnp.float32)  # (heads*BN, T, d_k)

    # Reassemble heads along lanes in registers (single concatenate, no
    # VMEM scratch round trip) and apply the output projection.
    ctx = ctx.reshape(heads, BN, T, head_dim)
    ctx = jnp.concatenate([ctx[h] for h in range(heads)], axis=-1)  # (BN, T, C)

    out = jnp.dot(ctx.reshape(GT, C), wo_ref[...],
                  preferred_element_type=jnp.float32) + bo_ref[0]
    out_ref[...] = out.reshape(BN, T, C).astype(out_ref.dtype)


def prepare_tmha_params(params, heads):
    """One-time parameter transform (hoisted out of the forward path)."""
    wq, wk, wv, wo, bo = params
    C = wq.shape[0]
    head_dim = C // heads
    assert head_dim * heads == C, "embed_size must be divisible by heads"
    inv_sqrt_dk = 1.0 / math.sqrt(head_dim)
    return (jnp.asarray(wq, jnp.float32) * inv_sqrt_dk,   # fold the 1/sqrt(d_k)
            jnp.asarray(wk, jnp.float32),
            jnp.asarray(wv, jnp.float32),
            jnp.asarray(wo, jnp.float32),
            jnp.asarray(bo, jnp.float32).reshape(1, C))


@functools.partial(jax.jit, static_argnames=("heads",))
def tmha_pallas(input_Q, input_K, input_V, prepared_params, *, heads):
    """TMultiHeadAttention forward. Inputs: [B, N, T, C] float32."""
    B, N, T, C = input_Q.shape
    head_dim = C // heads
    assert head_dim * heads == C, "embed_size must be divisible by heads"
    BN = B * N
    wq_s, wk, wv, wo, bo2 = prepared_params

    xq = input_Q.reshape(BN, T, C)     # leading-dim merge: free metadata reshape
    xk = input_K.reshape(BN, T, C)
    xv = input_V.reshape(BN, T, C)

    kernel = functools.partial(_tmha_kernel, heads=heads, head_dim=head_dim,
                               BN=BN, T=T, C=C)

    # Real cost (no block-diagonal inflation).
    flops = (3 * 2 * BN * T * C * C                 # Q/K/V projections
             + 4 * BN * heads * T * T * head_dim    # scores + context
             + 2 * BN * T * C * C)                  # output projection
    transcendentals = BN * heads * T * T            # exp
    bytes_accessed = 4 * (3 * BN * T * C            # xq/xk/xv
                          + 4 * C * C + C           # weights + bias
                          + BN * T * C)             # output

    vmem_spec = pl.BlockSpec(memory_space=pltpu.MemorySpace.VMEM)

    out = pl.pallas_call(
        kernel,
        out_shape=jax.ShapeDtypeStruct((BN, T, C), jnp.float32),
        in_specs=[vmem_spec] * 8,     # whole arrays resident in VMEM, no grid
        out_specs=vmem_spec,
        cost_estimate=pl.CostEstimate(flops=flops,
                                      transcendentals=transcendentals,
                                      bytes_accessed=bytes_accessed),
    )(xq, xk, xv, wq_s, wk, wv, wo, bo2)

    return out.reshape(B, N, T, C)


def tmha_reference(input_Q, input_K, input_V, params, heads):
    """Plain-JAX reference mirroring the PyTorch forward."""
    B, N, T, C = input_Q.shape
    head_dim = C // heads
    wq, wk, wv, wo, bo = params

    def split_heads(x):
        # [B,N,T,C] -> [B,heads,N,T,d_k]  (matches .view + permute(0,3,1,2,4))
        return x.reshape(B, N, T, heads, head_dim).transpose(0, 3, 1, 2, 4)

    Q = split_heads(input_Q @ wq)
    K = split_heads(input_K @ wk)
    V = split_heads(input_V @ wv)

    scores = jnp.einsum('bhntd,bhnsd->bhnts', Q, K) / np.sqrt(head_dim)
    attn = jax.nn.softmax(scores, axis=-1)
    ctx = jnp.einsum('bhnts,bhnsd->bhntd', attn, V)
    ctx = ctx.transpose(0, 2, 3, 1, 4).reshape(B, N, T, C)
    return ctx @ wo + bo


if __name__ == "__main__":
    B, N, T, C = 2, 4, 8, 32
    heads = 4

    key = jax.random.PRNGKey(0)
    k_q, k_k, k_v, k_wq, k_wk, k_wv, k_wo, k_bo = jax.random.split(key, 8)

    input_Q = jax.random.normal(k_q, (B, N, T, C), dtype=jnp.float32)
    input_K = jax.random.normal(k_k, (B, N, T, C), dtype=jnp.float32)
    input_V = jax.random.normal(k_v, (B, N, T, C), dtype=jnp.float32)

    # Deterministic parameter init (stored as [in, out] so projection is x @ W).
    scale = 1.0 / math.sqrt(C)
    wq = jax.random.uniform(k_wq, (C, C), jnp.float32, -scale, scale)
    wk = jax.random.uniform(k_wk, (C, C), jnp.float32, -scale, scale)
    wv = jax.random.uniform(k_wv, (C, C), jnp.float32, -scale, scale)
    wo = jax.random.uniform(k_wo, (C, C), jnp.float32, -scale, scale)
    bo = jax.random.uniform(k_bo, (C,), jnp.float32, -scale, scale)
    params = (wq, wk, wv, wo, bo)

    prepared = prepare_tmha_params(params, heads)   # one-time, outside forward

    out = tmha_pallas(input_Q, input_K, input_V, prepared, heads=heads)
    out = jax.block_until_ready(out)

    ref = tmha_reference(input_Q, input_K, input_V, params, heads)
    np.testing.assert_allclose(np.asarray(out), np.asarray(ref),
                               rtol=1e-5, atol=1e-5)
    print("KERNEL_OK")
</pallas_src>

<mosaic_0001>
module attributes {stable_mosaic.version = 11 : i64} {
  func.func @_tmha_kernel(%arg0: memref<8x8x32xf32, #tpu.memory_space<vmem>>, %arg1: memref<8x8x32xf32, #tpu.memory_space<vmem>>, %arg2: memref<8x8x32xf32, #tpu.memory_space<vmem>>, %arg3: memref<32x32xf32, #tpu.memory_space<vmem>>, %arg4: memref<32x32xf32, #tpu.memory_space<vmem>>, %arg5: memref<32x32xf32, #tpu.memory_space<vmem>>, %arg6: memref<32x32xf32, #tpu.memory_space<vmem>>, %arg7: memref<1x32xf32, #tpu.memory_space<vmem>>, %arg8: memref<8x8x32xf32, #tpu.memory_space<vmem>>) attributes {dimension_semantics = [], scalar_prefetch = 0 : i64, scratch_operands = 0 : i64, tpu.core_type = #tpu.core_type<tc>} {
    %c0 = arith.constant 0 : index
    %c0_0 = arith.constant 0 : index
    %c0_1 = arith.constant 0 : index
    %0 = vector.load %arg0[%c0, %c0_0, %c0_1] : memref<8x8x32xf32, #tpu.memory_space<vmem>>, vector<8x8x32xf32>
    %1 = vector.shape_cast %0 : vector<8x8x32xf32> to vector<64x32xf32>
    %c0_2 = arith.constant 0 : index
    %c0_3 = arith.constant 0 : index
    %2 = vector.load %arg3[%c0_2, %c0_3] : memref<32x32xf32, #tpu.memory_space<vmem>>, vector<32x32xf32>
    %cst = arith.constant dense<0.000000e+00> : vector<64x32xf32>
    %3 = tpu.matmul %1, %2, %cst {dimension_numbers = #tpu.dot_dimension_numbers<[1], [0], [0], [1], [0, 0, 1, 1], [], []>} : vector<64x32xf32>, vector<32x32xf32>, vector<64x32xf32> -> vector<64x32xf32>
    %4 = vector.shape_cast %3 : vector<64x32xf32> to vector<8x8x32xf32>
    %c0_4 = arith.constant 0 : index
    %c0_5 = arith.constant 0 : index
    %c0_6 = arith.constant 0 : index
    %5 = vector.load %arg1[%c0_4, %c0_5, %c0_6] : memref<8x8x32xf32, #tpu.memory_space<vmem>>, vector<8x8x32xf32>
    %6 = vector.shape_cast %5 : vector<8x8x32xf32> to vector<64x32xf32>
    %c0_7 = arith.constant 0 : index
    %c0_8 = arith.constant 0 : index
    %7 = vector.load %arg4[%c0_7, %c0_8] : memref<32x32xf32, #tpu.memory_space<vmem>>, vector<32x32xf32>
    %cst_9 = arith.constant dense<0.000000e+00> : vector<64x32xf32>
    %8 = tpu.matmul %6, %7, %cst_9 {dimension_numbers = #tpu.dot_dimension_numbers<[1], [0], [0], [1], [0, 0, 1, 1], [], []>} : vector<64x32xf32>, vector<32x32xf32>, vector<64x32xf32> -> vector<64x32xf32>
    %9 = vector.shape_cast %8 : vector<64x32xf32> to vector<8x8x32xf32>
    %c0_10 = arith.constant 0 : index
    %c0_11 = arith.constant 0 : index
    %c0_12 = arith.constant 0 : index
    %10 = vector.load %arg2[%c0_10, %c0_11, %c0_12] : memref<8x8x32xf32, #tpu.memory_space<vmem>>, vector<8x8x32xf32>
    %11 = vector.shape_cast %10 : vector<8x8x32xf32> to vector<64x32xf32>
    %c0_13 = arith.constant 0 : index
    %c0_14 = arith.constant 0 : index
    %12 = vector.load %arg5[%c0_13, %c0_14] : memref<32x32xf32, #tpu.memory_space<vmem>>, vector<32x32xf32>
    %cst_15 = arith.constant dense<0.000000e+00> : vector<64x32xf32>
    %13 = tpu.matmul %11, %12, %cst_15 {dimension_numbers = #tpu.dot_dimension_numbers<[1], [0], [0], [1], [0, 0, 1, 1], [], []>} : vector<64x32xf32>, vector<32x32xf32>, vector<64x32xf32> -> vector<64x32xf32>
    %14 = vector.shape_cast %13 : vector<64x32xf32> to vector<8x8x32xf32>
    %15 = vector.extract_strided_slice %4 {offsets = [0, 0, 0], sizes = [8, 8, 8], strides = [1, 1, 1]} : vector<8x8x32xf32> to vector<8x8x8xf32>
    %16 = vector.extract_strided_slice %4 {offsets = [0, 0, 8], sizes = [8, 8, 8], strides = [1, 1, 1]} : vector<8x8x32xf32> to vector<8x8x8xf32>
    %17 = vector.extract_strided_slice %4 {offsets = [0, 0, 16], sizes = [8, 8, 8], strides = [1, 1, 1]} : vector<8x8x32xf32> to vector<8x8x8xf32>
    %18 = vector.extract_strided_slice %4 {offsets = [0, 0, 24], sizes = [8, 8, 8], strides = [1, 1, 1]} : vector<8x8x32xf32> to vector<8x8x8xf32>
    %19 = vector.shape_cast %15 : vector<8x8x8xf32> to vector<1x8x8x8xf32>
    %20 = vector.shape_cast %16 : vector<8x8x8xf32> to vector<1x8x8x8xf32>
    %21 = vector.shape_cast %17 : vector<8x8x8xf32> to vector<1x8x8x8xf32>
    %22 = vector.shape_cast %18 : vector<8x8x8xf32> to vector<1x8x8x8xf32>
    %23 = tpu.concatenate %19, %20, %21, %22 in 0 : vector<1x8x8x8xf32>, vector<1x8x8x8xf32>, vector<1x8x8x8xf32>, vector<1x8x8x8xf32> -> vector<4x8x8x8xf32>
    %24 = vector.shape_cast %23 : vector<4x8x8x8xf32> to vector<32x8x8xf32>
    %25 = vector.extract_strided_slice %9 {offsets = [0, 0, 0], sizes = [8, 8, 8], strides = [1, 1, 1]} : vector<8x8x32xf32> to vector<8x8x8xf32>
    %26 = vector.extract_strided_slice %9 {offsets = [0, 0, 8], sizes = [8, 8, 8], strides = [1, 1, 1]} : vector<8x8x32xf32> to vector<8x8x8xf32>
    %27 = vector.extract_strided_slice %9 {offsets = [0, 0, 16], sizes = [8, 8, 8], strides = [1, 1, 1]} : vector<8x8x32xf32> to vector<8x8x8xf32>
    %28 = vector.extract_strided_slice %9 {offsets = [0, 0, 24], sizes = [8, 8, 8], strides = [1, 1, 1]} : vector<8x8x32xf32> to vector<8x8x8xf32>
    %29 = vector.shape_cast %25 : vector<8x8x8xf32> to vector<1x8x8x8xf32>
    %30 = vector.shape_cast %26 : vector<8x8x8xf32> to vector<1x8x8x8xf32>
    %31 = vector.shape_cast %27 : vector<8x8x8xf32> to vector<1x8x8x8xf32>
    %32 = vector.shape_cast %28 : vector<8x8x8xf32> to vector<1x8x8x8xf32>
    %33 = tpu.concatenate %29, %30, %31, %32 in 0 : vector<1x8x8x8xf32>, vector<1x8x8x8xf32>, vector<1x8x8x8xf32>, vector<1x8x8x8xf32> -> vector<4x8x8x8xf32>
    %34 = vector.shape_cast %33 : vector<4x8x8x8xf32> to vector<32x8x8xf32>
    %35 = vector.extract_strided_slice %14 {offsets = [0, 0, 0], sizes = [8, 8, 8], strides = [1, 1, 1]} : vector<8x8x32xf32> to vector<8x8x8xf32>
    %36 = vector.extract_strided_slice %14 {offsets = [0, 0, 8], sizes = [8, 8, 8], strides = [1, 1, 1]} : vector<8x8x32xf32> to vector<8x8x8xf32>
    %37 = vector.extract_strided_slice %14 {offsets = [0, 0, 16], sizes = [8, 8, 8], strides = [1, 1, 1]} : vector<8x8x32xf32> to vector<8x8x8xf32>
    %38 = vector.extract_strided_slice %14 {offsets = [0, 0, 24], sizes = [8, 8, 8], strides = [1, 1, 1]} : vector<8x8x32xf32> to vector<8x8x8xf32>
    %39 = vector.shape_cast %35 : vector<8x8x8xf32> to vector<1x8x8x8xf32>
    %40 = vector.shape_cast %36 : vector<8x8x8xf32> to vector<1x8x8x8xf32>
    %41 = vector.shape_cast %37 : vector<8x8x8xf32> to vector<1x8x8x8xf32>
    %42 = vector.shape_cast %38 : vector<8x8x8xf32> to vector<1x8x8x8xf32>
    %43 = tpu.concatenate %39, %40, %41, %42 in 0 : vector<1x8x8x8xf32>, vector<1x8x8x8xf32>, vector<1x8x8x8xf32>, vector<1x8x8x8xf32> -> vector<4x8x8x8xf32>
    %44 = vector.shape_cast %43 : vector<4x8x8x8xf32> to vector<32x8x8xf32>
    "tpu.trace_start"() <{level = 10 : i32, message = "btd,bsd->bts"}> : () -> ()
    %cst_16 = arith.constant dense<0.000000e+00> : vector<32x8x8xf32>
    %45 = tpu.matmul %24, %34, %cst_16 {dimension_numbers = #tpu.dot_dimension_numbers<[2], [2], [1], [1], [0, 0, 0, 1, 1, 1], [0], [0]>} : vector<32x8x8xf32>, vector<32x8x8xf32>, vector<32x8x8xf32> -> vector<32x8x8xf32>
    "tpu.trace_stop"() : () -> ()
    %cst_17 = arith.constant dense<0xFF800000> : vector<32x8xf32>
    %46 = vector.multi_reduction <maximumf>, %45, %cst_17 [2] : vector<32x8x8xf32> to vector<32x8xf32>
    %47 = vector.shape_cast %46 : vector<32x8xf32> to vector<32x8x1xf32>
    %48 = vector.broadcast %47 : vector<32x8x1xf32> to vector<32x8x8xf32>
    %49 = arith.subf %45, %48 : vector<32x8x8xf32>
    %50 = math.exp %49 : vector<32x8x8xf32>
    %cst_18 = arith.constant dense<0.000000e+00> : vector<32x8xf32>
    %51 = vector.multi_reduction <add>, %50, %cst_18 [2] : vector<32x8x8xf32> to vector<32x8xf32>
    %52 = vector.shape_cast %51 : vector<32x8xf32> to vector<32x8x1xf32>
    %53 = tpu.reciprocal %52 : vector<32x8x1xf32> -> vector<32x8x1xf32>
    %54 = vector.broadcast %53 : vector<32x8x1xf32> to vector<32x8x8xf32>
    %55 = arith.mulf %50, %54 : vector<32x8x8xf32>
    "tpu.trace_start"() <{level = 10 : i32, message = "bts,bsd->btd"}> : () -> ()
    %cst_19 = arith.constant dense<0.000000e+00> : vector<32x8x8xf32>
    %56 = tpu.matmul %55, %44, %cst_19 {dimension_numbers = #tpu.dot_dimension_numbers<[2], [1], [1], [2], [0, 0, 0, 1, 1, 2], [0], [0]>} : vector<32x8x8xf32>, vector<32x8x8xf32>, vector<32x8x8xf32> -> vector<32x8x8xf32>
    "tpu.trace_stop"() : () -> ()
    %57 = vector.shape_cast %56 : vector<32x8x8xf32> to vector<4x8x8x8xf32>
    %58 = vector.extract_strided_slice %57 {offsets = [0, 0, 0, 0], sizes = [1, 8, 8, 8], strides = [1, 1, 1, 1]} : vector<4x8x8x8xf32> to vector<1x8x8x8xf32>
    %59 = vector.shape_cast %58 : vector<1x8x8x8xf32> to vector<8x8x8xf32>
    %60 = vector.extract_strided_slice %57 {offsets = [1, 0, 0, 0], sizes = [1, 8, 8, 8], strides = [1, 1, 1, 1]} : vector<4x8x8x8xf32> to vector<1x8x8x8xf32>
    %61 = vector.shape_cast %60 : vector<1x8x8x8xf32> to vector<8x8x8xf32>
    %62 = vector.extract_strided_slice %57 {offsets = [2, 0, 0, 0], sizes = [1, 8, 8, 8], strides = [1, 1, 1, 1]} : vector<4x8x8x8xf32> to vector<1x8x8x8xf32>
    %63 = vector.shape_cast %62 : vector<1x8x8x8xf32> to vector<8x8x8xf32>
    %64 = vector.extract_strided_slice %57 {offsets = [3, 0, 0, 0], sizes = [1, 8, 8, 8], strides = [1, 1, 1, 1]} : vector<4x8x8x8xf32> to vector<1x8x8x8xf32>
    %65 = vector.shape_cast %64 : vector<1x8x8x8xf32> to vector<8x8x8xf32>
    %66 = tpu.concatenate %59, %61, %63, %65 in 2 : vector<8x8x8xf32>, vector<8x8x8xf32>, vector<8x8x8xf32>, vector<8x8x8xf32> -> vector<8x8x32xf32>
    %67 = vector.shape_cast %66 : vector<8x8x32xf32> to vector<64x32xf32>
    %c0_20 = arith.constant 0 : index
    %c0_21 = arith.constant 0 : index
    %68 = vector.load %arg6[%c0_20, %c0_21] : memref<32x32xf32, #tpu.memory_space<vmem>>, vector<32x32xf32>
    %cst_22 = arith.constant dense<0.000000e+00> : vector<64x32xf32>
    %69 = tpu.matmul %67, %68, %cst_22 {dimension_numbers = #tpu.dot_dimension_numbers<[1], [0], [0], [1], [0, 0, 1, 1], [], []>} : vector<64x32xf32>, vector<32x32xf32>, vector<64x32xf32> -> vector<64x32xf32>
    %c0_23 = arith.constant 0 : index
    %c0_24 = arith.constant 0 : index
    %70 = vector.load %arg7[%c0_23, %c0_24] : memref<1x32xf32, #tpu.memory_space<vmem>>, vector<1x32xf32>
    %71 = vector.shape_cast %70 : vector<1x32xf32> to vector<32xf32>
    %72 = vector.shape_cast %71 : vector<32xf32> to vector<1x32xf32>
    %73 = vector.broadcast %72 : vector<1x32xf32> to vector<64x32xf32>
    %74 = arith.addf %69, %73 : vector<64x32xf32>
    %75 = vector.shape_cast %74 : vector<64x32xf32> to vector<8x8x32xf32>
    %c0_25 = arith.constant 0 : index
    %c0_26 = arith.constant 0 : index
    %c0_27 = arith.constant 0 : index
    %76 = vector.load %arg8[%c0_25, %c0_26, %c0_27] : memref<8x8x32xf32, #tpu.memory_space<vmem>>, vector<8x8x32xf32>
    tpu.vector_store %arg8[%c0_25, %c0_26, %c0_27], %75 {strides = array<i32>} : memref<8x8x32xf32, #tpu.memory_space<vmem>>, vector<8x8x32xf32>,
    return
  }
}

</mosaic_0001>

<bundles_post_ra>
// kernel: tmha_pallas.1
= control target key start
LH: loop header
LB: loop body
LE: loop exit
PB: predicated region body
PF: predicated region fallthrough
CT: control target
= control target key end

     0   :  { %13 = vsyncpa [#allocation3], 0  ;;  %s8229_s0 = inlined_call_operand.hbm [shape: f32[8,8,32], index: 0, kind: input, shape index: {}]   ;;  %s8230_s1 = inlined_call_operand.hbm [shape: f32[8,8,32], index: 1, kind: input, shape index: {}]   ;;  %s8231_s2 = inlined_call_operand.hbm [shape: f32[8,8,32], index: 2, kind: input, shape index: {}]   ;;  %s8232_s3 = inlined_call_operand.hbm [shape: f32[32,32], index: 3, kind: input, shape index: {}]   ;;  %s8233_s4 = inlined_call_operand.hbm [shape: f32[32,32], index: 4, kind: input, shape index: {}]   ;;  %s8234_s5 = inlined_call_operand.hbm [shape: f32[32,32], index: 5, kind: input, shape index: {}]   ;;  %s8235_s6 = inlined_call_operand.hbm [shape: f32[32,32], index: 6, kind: input, shape index: {}]   ;;  %s8236_s7 = inlined_call_operand.vmem [shape: f32[1,32], index: 7, kind: input, shape index: {}]   ;;  %s8237_s8 = inlined_call_operand.hbm [shape: f32[8,8,32], index: 8, kind: output, shape index: {}]  }
   0x1   :  { %14 = vsyncpa [#allocation6], 0 }
   0x2   :  { %15 = vsyncpa [#allocation9], 0 }
   0x3   :  { %16 = vsyncpa [#allocation12], 0 }
   0x4   :  { %17 = vsyncpa [#allocation4], 0  ;;  %s7116_s27 = smov [#allocation5]   ;;  %s7117_s29 = smov [#allocation8]  }
   0x5   :  { %s35_s28 = sshll.u32 %s7116_s27, 4  ;;  %s59_s30 = sshll.u32 %s7117_s29, 4  ;;  %s36_s28 = int_to_ptr.vmem [resolvable:$true] %s35_s28  ;;  %s60_s30 = int_to_ptr.vmem [resolvable:$true] %s59_s30 }
   0x6   :  { %s6954_s9 = scalar_lea.vmem %s36_s28, 1024  ;;  %p6959_p1 = scmp.lt.s32.totalorder %s36_s28, %s36_s28 }
   0x7   :  { %p6955_p0 = scmp.ne.s32.totalorder %s36_s28, %s6954_s9  ;;  %p6960_p2 = scmp.lt.s32.totalorder %s6954_s9, %s6954_s9 }
   0x9   :  { %p6961_p3 = por %p6960_p2, %p6959_p1 }
   0xb   :  { %p6962_p4 = pnand %p6961_p3, %p6955_p0 }
   0xd   :  { %6965 = shalt.err (!%p6962_p4)
}
   0xe   :  { %s7118_s10 = smov 128   ;;  %s7119_s11 = smov 8  }
   0xf   :  { %41 = dma.hbm_to_vmem [thread:$0]  %s8230_s1, 1024, %s36_s28, [#allocation6], %s7118_s10, %s7118_s10, %s7119_s11  }
  0x10   :  { %s6974_s14 = scalar_lea.vmem %s60_s30, 512  ;;  %p6979_p6 = scmp.lt.s32.totalorder %s60_s30, %s60_s30 }
  0x11   :  { %p6975_p5 = scmp.ne.s32.totalorder %s60_s30, %s6974_s14  ;;  %p6980_p7 = scmp.lt.s32.totalorder %s6974_s14, %s6974_s14 }
  0x13   :  { %p6981_p8 = por %p6980_p7, %p6979_p6 }
  0x15   :  { %p6982_p9 = pnand %p6981_p8, %p6975_p5 }
  0x17   :  { %6985 = shalt.err (!%p6982_p9)
}
  0x18   :  { %65 = dma.hbm_to_vmem [thread:$0]  %s8232_s3, 512, %s60_s30, [#allocation9], %s7118_s10, %s7118_s10, %s7119_s11  }
  0x19   :  { %s7120_s17 = smov [#allocation11]   ;;  %s7121_s19 = smov [#allocation2]  }
  0x1a   :  { %s83_s18 = sshll.u32 %s7120_s17, 4  ;;  %s23_s20 = sshll.u32 %s7121_s19, 4  ;;  %s84_s18 = int_to_ptr.vmem [resolvable:$true] %s83_s18  ;;  %s24_s20 = int_to_ptr.vmem [resolvable:$true] %s23_s20 }
  0x1b   :  { %s6994_s1 = scalar_lea.vmem %s84_s18, 512  ;;  %p6999_p11 = scmp.lt.s32.totalorder %s84_s18, %s84_s18 }
  0x1c   :  { %p6995_p10 = scmp.ne.s32.totalorder %s84_s18, %s6994_s1  ;;  %p7000_p12 = scmp.lt.s32.totalorder %s6994_s1, %s6994_s1 }
  0x1e   :  { %p7001_p13 = por %p7000_p12, %p6999_p11 }
  0x20   :  { %p7002_p0 = pnand %p7001_p13, %p6995_p10 }
  0x22   :  { %7005 = shalt.err (!%p7002_p0)
}
  0x23   :  { %89 = dma.hbm_to_vmem [thread:$0]  %s8234_s5, 512, %s84_s18, [#allocation12], %s7118_s10, %s7118_s10, %s7119_s11  }
  0x24   :  { %s7014_s3 = scalar_lea.vmem %s24_s20, 1024  ;;  %p7019_p2 = scmp.lt.s32.totalorder %s24_s20, %s24_s20 }
  0x25   :  { %p7015_p1 = scmp.ne.s32.totalorder %s24_s20, %s7014_s3  ;;  %p7020_p3 = scmp.lt.s32.totalorder %s7014_s3, %s7014_s3 }
  0x27   :  { %p7021_p4 = por %p7020_p3, %p7019_p2 }
  0x29   :  { %p7022_p5 = pnand %p7021_p4, %p7015_p1 }
  0x2b   :  { %7025 = shalt.err (!%p7022_p5)
}
  0x2c   :  { %29 = dma.hbm_to_vmem [thread:$0]  %s8229_s0, 1024, %s24_s20, [#allocation3], %s7118_s10, %s7118_s10, %s7119_s11  }
  0x2d   :  { %s7122_s25 = smov [#allocation7]   ;;  %s7123_s27 = smov [#allocation10]  }
  0x2e   :  { %s47_s26 = sshll.u32 %s7122_s25, 4  ;;  %s71_s28 = sshll.u32 %s7123_s27, 4  ;;  %s48_s26 = int_to_ptr.vmem [resolvable:$true] %s47_s26  ;;  %s72_s28 = int_to_ptr.vmem [resolvable:$true] %s71_s28 }
  0x2f   :  { %s7034_s5 = scalar_lea.vmem %s48_s26, 1024  ;;  %p7039_p7 = scmp.lt.s32.totalorder %s48_s26, %s48_s26 }
  0x30   :  { %p7035_p6 = scmp.ne.s32.totalorder %s48_s26, %s7034_s5  ;;  %p7040_p8 = scmp.lt.s32.totalorder %s7034_s5, %s7034_s5 }
  0x32   :  { %p7041_p9 = por %p7040_p8, %p7039_p7 }
  0x34   :  { %p7042_p10 = pnand %p7041_p9, %p7035_p6 }
  0x36   :  { %7045 = shalt.err (!%p7042_p10)
}
  0x37   :  { %53 = dma.hbm_to_vmem [thread:$0]  %s8231_s2, 1024, %s48_s26, [#allocation6], %s7118_s10, %s7118_s10, %s7119_s11  }
  0x38   :  { %s7054_s0 = scalar_lea.vmem %s72_s28, 512  ;;  %p7059_p12 = scmp.lt.s32.totalorder %s72_s28, %s72_s28 }
  0x39   :  { %p7055_p11 = scmp.ne.s32.totalorder %s72_s28, %s7054_s0  ;;  %p7060_p13 = scmp.lt.s32.totalorder %s7054_s0, %s7054_s0 }
  0x3b   :  { %p7061_p0 = por %p7060_p13, %p7059_p12 }
  0x3d   :  { %p7062_p1 = pnand %p7061_p0, %p7055_p11 }
  0x3f   :  { %7065 = shalt.err (!%p7062_p1)
}
  0x40   :  { %77 = dma.hbm_to_vmem [thread:$0]  %s8233_s4, 512, %s72_s28, [#allocation9], %s7118_s10, %s7118_s10, %s7119_s11  }
  0x41   :  { %s7124_s13 = smov [#allocation13]  }
  0x42   :  { %s95_s14 = sshll.u32 %s7124_s13, 4  ;;  %s96_s14 = int_to_ptr.vmem [resolvable:$true] %s95_s14 }
  0x43   :  { %s7074_s15 = scalar_lea.vmem %s96_s14, 512  ;;  %p7079_p3 = scmp.lt.s32.totalorder %s96_s14, %s96_s14 }
  0x44   :  { %p7075_p2 = scmp.ne.s32.totalorder %s96_s14, %s7074_s15  ;;  %p7080_p4 = scmp.lt.s32.totalorder %s7074_s15, %s7074_s15 }
  0x46   :  { %p7081_p5 = por %p7080_p4, %p7079_p3 }
  0x48   :  { %p7082_p6 = pnand %p7081_p5, %p7075_p2 }
  0x4a   :  { %7085 = shalt.err (!%p7082_p6)
}
  0x4b   :  { %101 = dma.hbm_to_vmem [thread:$0]  %s8235_s6, 512, %s96_s14, [#allocation12], %s7118_s10, %s7118_s10, %s7119_s11  }
  0x4c   :  { %7106 = dma.done.wait [#allocation3], 1024  }
  0x4d   :  { %7107 = vsyncadd [#allocation3], 4294966272 }
  0x4e   :  { %7108 = dma.done.wait [#allocation6], 2048  }
  0x4f   :  { %7109 = vsyncadd [#allocation6], 4294965248 }
  0x50   :  { %7110 = dma.done.wait [#allocation9], 1024  }
  0x51   :  { %7111 = vsyncadd [#allocation9], 4294966272 }
  0x52   :  { %7112 = dma.done.wait [#allocation12], 1024  }
  0x53   :  { %7113 = vsyncadd [#allocation12], 4294966272  ;;  %v136_v0 = vld [vmem:[#allocation8 + $0x18] sm:$0xff]  ;;  %v135_v1 = vld [vmem:[#allocation8 + $0x10] sm:$0xff]  ;;  %vm137_vm0 = vcmask 261120   ;;  %v8238_v36 = vmov 0.0  }
  0x54   :  { %6393 = vmatprep.subr.mxu0 %v136_v0  ;;  %6793 = vmatprep.subr.mxu1 %v136_v0  ;;  %v134_v2 = vld [vmem:[#allocation8 + $0x8] sm:$0xff]  ;;  %v133_v3 = vld [vmem:[#allocation8] sm:$0xff]  ;;  %v278_v8 = vld [vmem:[#allocation10 + $0x18] sm:$0xff]  ;;  %vm7126_vm1 = vmmov 0   ;;  %s7127_s4 = smov 120   ;;  %s7128_s6 = smov 112  }
  0x55   :  { %6394 = vmatpush3.msra.mxu0 %v136_v0  ;;  %6797 = vmatpush3.msra.mxu1 %v136_v0  ;;  %v125_v4 = vld [vmem:[#allocation2] sm:$0xff]  ;;  %v126_v6 = vld [vmem:[#allocation2 + $0x8] sm:$0xff]  ;;  %v131_v9 = vld [vmem:[#allocation2 + $0x30] sm:$0xff]  ;;  %vm741_vm2 = vcmask 64512   ;;  %s7129_s17 = smov 104   ;;  %s7130_s18 = smov 16  }
  0x56   :  { %6395 = vmatprep.subr.mxu0 %v135_v1  ;;  %6794 = vmatprep.subr.mxu1 %v135_v1  ;;  %v129_v5 = vld [vmem:[#allocation2 + $0x20] sm:$0xff]  ;;  %v130_v7 = vld [vmem:[#allocation2 + $0x28] sm:$0xff]  ;;  %v127_v10 = vld [vmem:[#allocation2 + $0x10] sm:$0xff]  ;;  %s7131_s19 = smov 24   ;;  %vm5902_vm3 = vcmask 130048   ;;  %vm5911_vm4 = vcmask 195584  }
  0x57   :  { %6396 = vmatpush3.msra.mxu0 %v135_v1  ;;  %6798 = vmatpush3.msra.mxu1 %v135_v1  ;;  %v277_v11 = vld [vmem:[#allocation10 + $0x10] sm:$0xff]  ;;  %v419_v12 = vld [vmem:[#allocation11 + $0x18] sm:$0xff]  ;;  %v276_v15 = vld [vmem:[#allocation10 + $0x8] sm:$0xff] }
  0x58   :  { %6397 = vmatprep.subr.mxu0 %v134_v2  ;;  %6795 = vmatprep.subr.mxu1 %v134_v2  ;;  %v128_v13 = vld [vmem:[#allocation2 + $0x18] sm:$0xff]  ;;  %v267_v16 = vld [vmem:[#allocation5] sm:$0xff]  ;;  %v418_v18 = vld [vmem:[#allocation11 + $0x10] sm:$0xff] }
  0x59   :  { %6398 = vmatpush3.msra.mxu0 %v134_v2  ;;  %6799 = vmatpush3.msra.mxu1 %v134_v2  ;;  %v132_v14 = vld [vmem:[#allocation2 + $0x38] sm:$0xff]  ;;  %v275_v17 = vld [vmem:[#allocation10] sm:$0xff]  ;;  %v268_v19 = vld [vmem:[#allocation5 + $0x8] sm:$0xff] }
  0x5a   :  { %6399 = vmatprep.subr.mxu0 %v133_v3  ;;  %6796 = vmatprep.subr.mxu1 %v133_v3  ;;  %v269_v20 = vld [vmem:[#allocation5 + $0x10] sm:$0xff]  ;;  %v417_v21 = vld [vmem:[#allocation11 + $0x8] sm:$0xff]  ;;  %v408_v22 = vld [vmem:[#allocation7] sm:$0xff] }
  0x5b   :  { %6400 = vmatpush3.msra.mxu0 %v133_v3  ;;  %6800 = vmatpush3.msra.mxu1 %v133_v3  ;;  %v416_v23 = vld [vmem:[#allocation11] sm:$0xff]  ;;  %v270_v24 = vld [vmem:[#allocation5 + $0x18] sm:$0xff]  ;;  %v409_v26 = vld [vmem:[#allocation7 + $0x8] sm:$0xff] }
  0x5c   :  { %6401 = vmatprep.mubr.msk.f32.mxu0 %vm137_vm0, %v125_v4  ;;  %6407 = vmatprep.mubr.msk.f32.mxu1 %vm137_vm0, %v129_v5  ;;  %v271_v25 = vld [vmem:[#allocation5 + $0x20] sm:$0xff]  ;;  %v410_v27 = vld [vmem:[#allocation7 + $0x10] sm:$0xff]  ;;  %v272_v28 = vld [vmem:[#allocation5 + $0x28] sm:$0xff] }
  0x5d   :  { %6402 = vmatmul.mubr.msk.f32.vlgmr.msra.gmra.mxu0 %vm137_vm0, %v126_v6  ;;  %6408 = vmatmul.mubr.msk.f32.vlgmr.msra.gmra.mxu1 %vm137_vm0, %v130_v7  ;;  %v273_v29 = vld [vmem:[#allocation5 + $0x30] sm:$0xff]  ;;  %v411_v30 = vld [vmem:[#allocation7 + $0x18] sm:$0xff]  ;;  %v412_v31 = vld [vmem:[#allocation7 + $0x20] sm:$0xff] }
  0x5e   :  { %6413 = vmatprep.subr.mxu1 %v278_v8  ;;  %6410 = vmatprep.mubr.msk.f32.mxu1 %vm137_vm0, %v131_v9  ;;  %v274_v32 = vld [vmem:[#allocation5 + $0x38] sm:$0xff]  ;;  %v413_v33 = vld [vmem:[#allocation7 + $0x28] sm:$0xff]  ;;  %v414_v34 = vld [vmem:[#allocation7 + $0x30] sm:$0xff] }
  0x5f   :  { %6414 = vmatpush3.msra.mxu1 %v278_v8  ;;  %6404 = vmatprep.mubr.msk.f32.mxu0 %vm137_vm0, %v127_v10  ;;  %v415_v35 = vld [vmem:[#allocation7 + $0x38] sm:$0xff] }
  0x60   :  { %6415 = vmatprep.subr.mxu1 %v277_v11  ;;  %6433 = vmatprep.subr.mxu0 %v419_v12 }
  0x61   :  { %6416 = vmatpush3.msra.mxu1 %v277_v11  ;;  %6405 = vmatmul.mubr.msk.f32.gmra.mxu0 %vm137_vm0, %v128_v13 }
  0x62   :  { %6411 = vmatmul.mubr.msk.f32.gmra.mxu1 %vm137_vm0, %v132_v14  ;;  %6417 = vmatprep.subr.mxu1 %v276_v15 }
  0x63   :  { %6418 = vmatpush3.msra.mxu1 %v276_v15  ;;  %6421 = vmatprep.mubr.msk.f32.mxu1 %vm137_vm0, %v267_v16 }
  0x64   :  { %6419 = vmatprep.subr.mxu1 %v275_v17  ;;  %6434 = vmatpush3.msra.mxu0 %v419_v12 }
  0x65   :  { %6420 = vmatpush3.msra.mxu1 %v275_v17  ;;  %6435 = vmatprep.subr.mxu0 %v418_v18 }
  0x66   :  { %6422 = vmatmul.mubr.msk.f32.vlgmr.msra.gmra.mxu1 %vm137_vm0, %v268_v19  ;;  %6436 = vmatpush3.msra.mxu0 %v418_v18 }
  0x67   :  { %6424 = vmatprep.mubr.msk.f32.mxu1 %vm137_vm0, %v269_v20  ;;  %6437 = vmatprep.subr.mxu0 %v417_v21 }
  0x68   :  { %6438 = vmatpush3.msra.mxu0 %v417_v21  ;;  %6441 = vmatprep.mubr.msk.f32.mxu0 %vm137_vm0, %v408_v22 }
  0x69   :  { %6439 = vmatprep.subr.mxu0 %v416_v23  ;;  %6453 = vmatprep.subr.mxu1 %v8238_v36 }
  0x6a   :  { %6425 = vmatmul.mubr.msk.f32.gmra.mxu1 %vm137_vm0, %v270_v24  ;;  %6440 = vmatpush3.msra.mxu0 %v416_v23 }
  0x6b   :  { %6427 = vmatprep.mubr.msk.f32.mxu1 %vm137_vm0, %v271_v25  ;;  %6442 = vmatmul.mubr.msk.f32.vlgmr.msra.gmra.mxu0 %vm137_vm0, %v409_v26 }
  0x6c   :  { %6444 = vmatprep.mubr.msk.f32.mxu0 %vm137_vm0, %v410_v27  ;;  %6473 = vmatprep.subr.mxu0 %v8238_v36 }
  0x6e   :  { %6428 = vmatmul.mubr.msk.f32.gmra.mxu1 %vm137_vm0, %v272_v28 }
  0x6f   :  { %6430 = vmatprep.mubr.msk.f32.mxu1 %vm137_vm0, %v273_v29  ;;  %6445 = vmatmul.mubr.msk.f32.gmra.mxu0 %vm137_vm0, %v411_v30 }
  0x70   :  { %6447 = vmatprep.mubr.msk.f32.mxu0 %vm137_vm0, %v412_v31 }
  0x72   :  { %6431 = vmatmul.mubr.msk.f32.gmra.mxu1 %vm137_vm0, %v274_v32 }
  0x73   :  { %6448 = vmatmul.mubr.msk.f32.gmra.mxu0 %vm137_vm0, %v413_v33  ;;  %6455 = vmatprep.mubr.msk.f32.mxu1 %vm7126_vm1, %v8238_v36 }
  0x74   :  { %6450 = vmatprep.mubr.msk.f32.mxu0 %vm137_vm0, %v414_v34 }
  0x77   :  { %6451 = vmatmul.mubr.msk.f32.gmra.mxu0 %vm137_vm0, %v415_v35 }
  0x78   :  { %6475 = vmatprep.mubr.msk.f32.mxu0 %vm7126_vm1, %v8238_v36 }
 0x11d   :  { %v7250_v37 = vpop.f32.mrf.mxu0  ;;  %v7252_v38 = vpop.f32.mrf.mxu1 }
 0x11e   :  { %559 = vrot.lane.b32.xlu1 %v7250_v37, %s7127_s4 }
 0x11f   :  { %v7256_v39 = vpop.f32.mrf.mxu1  ;;  %v7264_v41 = vpop.f32.mrf.mxu0 }
 0x120   :  { %565 = vrot.lane.b32.xlu0 %v7256_v39, %s7127_s4 }
 0x121   :  { %v7274_v44 = vpop.f32.mrf.mxu0 }
 0x122   :  { %v7260_v40 = vpop.f32.mrf.mxu1  ;;  %567 = vrot.lane.b32.xlu1 %v7252_v38, %s7127_s4 }
 0x123   :  { %v7287_v47 = vpop.f32.mrf.mxu0 }
 0x124   :  { %v7266_v42 = vpop.f32.mrf.mxu1  ;;  %573 = vrot.lane.b32.xlu0 %v7264_v41, %s7128_s6 }
 0x126   :  { %v7270_v43 = vpop.f32.mrf.mxu1  ;;  %575 = vrot.lane.b32.xlu1 %v7250_v37, %s7128_s6 }
 0x128   :  { %v7276_v45 = vpop.f32.mrf.mxu1  ;;  %581 = vrot.lane.b32.xlu0 %v7256_v39, %s7128_s6 }
 0x129   :  { %6454 = vmatpush3.xpose.msk.msra.mxu1 %vm741_vm2, %v7276_v45 }
 0x12a   :  { %v7282_v46 = vpop.f32.mrf.mxu1  ;;  %583 = vrot.lane.b32.xlu1 %v7252_v38, %s7128_s6  ;;  %6458 = vmatprep.subr.mxu1 %v8238_v36 }
 0x12b   :  { %v7405_v53 = vpop.f32.mrf.mxu0 }
 0x12c   :  { %v7289_v48 = vpop.f32.mrf.mxu1  ;;  %6456 = vmatmul.mubr.msk.f32.vlgmr.msra.gmra.mxu1 %vm741_vm2, %v7264_v41  ;;  %561 = vrot.lane.b32.xlu0 %v7287_v47, %s7127_s4 }
 0x12d   :  { %6459 = vmatpush3.xpose.msk.msra.mxu1 %vm741_vm2, %v7270_v43  ;;  %6460 = vmatprep.mubr.msk.f32.mxu1 %vm7126_vm1, %v8238_v36  ;;  %v7410_v54 = vpop.f32.mrf.mxu0 }
 0x12e   :  { %v7299_v49 = vpop.f32.mrf.mxu1  ;;  %557 = vrot.lane.b32.xlu1 %v7264_v41, %s7127_s4  ;;  %6463 = vmatprep.subr.mxu1 %v8238_v36 }
 0x12f   :  { %v7415_v55 = vpop.f32.mrf.mxu0 }
 0x130   :  { %v389_v50 = vpop.f32.mrf.mxu1  ;;  %6461 = vmatmul.mubr.msk.f32.vlgmr.msra.gmra.mxu1 %vm741_vm2, %v7250_v37  ;;  %569 = vrot.lane.b32.xlu0 %v7266_v42, %s7127_s4 }
 0x131   :  { %6464 = vmatpush3.xpose.msk.msra.mxu1 %vm741_vm2, %v7289_v48  ;;  %6474 = vmatpush3.xpose.msk.msra.mxu0 %vm741_vm2, %v389_v50  ;;  %v7420_v56 = vpop.f32.mrf.mxu0 }
 0x132   :  { %v6432_v51 = vpop.f32.mrf.mxu1  ;;  %6465 = vmatprep.mubr.msk.f32.mxu1 %vm7126_vm1, %v8238_v36  ;;  %563 = vrot.lane.b32.xlu1 %v7274_v44, %s7127_s4 }
 0x133   :  { %6468 = vmatprep.subr.mxu1 %v8238_v36  ;;  %6483 = vmatprep.subr.mxu0 %v8238_v36  ;;  %v7426_v57 = vpop.f32.mrf.mxu0 }
 0x134   :  { %v399_v52 = vpop.f32.mrf.mxu1  ;;  %6466 = vmatmul.mubr.msk.f32.vlgmr.msra.gmra.mxu1 %vm741_vm2, %v7287_v47  ;;  %6476 = vmatmul.mubr.msk.f32.vlgmr.msra.gmra.mxu0 %vm741_vm2, %v7256_v39 }
 0x135   :  { %6484 = vmatpush3.xpose.msk.msra.mxu0 %vm741_vm2, %v399_v52  ;;  %577 = vrot.lane.b32.xlu0 %v7287_v47, %s7128_s6  ;;  %v7432_v58 = vpop.f32.mrf.mxu0 }
 0x136   :  { %6469 = vmatpush3.xpose.msk.msra.mxu1 %vm741_vm2, %v7282_v46  ;;  %6485 = vmatprep.mubr.msk.f32.mxu0 %vm7126_vm1, %v8238_v36 }
 0x137   :  { %571 = vrot.lane.b32.xlu1 %v7260_v40, %s7127_s4  ;;  %6470 = vmatprep.mubr.msk.f32.mxu1 %vm7126_vm1, %v8238_v36  ;;  %v7440_v59 = vpop.f32.mrf.mxu0 }
 0x138   :  { %6478 = vmatprep.subr.mxu1 %v8238_v36  ;;  %6486 = vmatmul.mubr.msk.f32.vlgmr.msra.gmra.mxu0 %vm741_vm2, %v7266_v42 }
 0x139   :  { %6471 = vmatmul.mubr.msk.f32.vlgmr.msra.gmra.mxu1 %vm741_vm2, %v7274_v44  ;;  %585 = vrot.lane.b32.xlu0 %v7266_v42, %s7128_s6  ;;  %v7456_v0 = vpop.f32.mrf.mxu0 }
 0x13a   :  { %6479 = vmatpush3.xpose.msk.msra.mxu1 %vm741_vm2, %v7299_v49  ;;  %6480 = vmatprep.mubr.msk.f32.mxu1 %vm7126_vm1, %v8238_v36 }
 0x13b   :  { %579 = vrot.lane.b32.xlu1 %v7274_v44, %s7128_s6  ;;  %6488 = vmatprep.subr.mxu1 %v8238_v36 }
 0x13c   :  { %6493 = vmatprep.subr.mxu0 %v8238_v36  ;;  %6495 = vmatprep.mubr.msk.f32.mxu0 %vm7126_vm1, %v8238_v36 }
 0x13d   :  { %6481 = vmatmul.mubr.msk.f32.vlgmr.msra.gmra.mxu1 %vm741_vm2, %v7252_v38  ;;  %615 = vrot.lane.b32.xlu0 %v7270_v43, %s7127_s4 }
 0x13e   :  { %6489 = vmatpush3.xpose.msk.msra.mxu1 %vm741_vm2, %v6432_v51  ;;  %6490 = vmatprep.mubr.msk.f32.mxu1 %vm7126_vm1, %v8238_v36 }
 0x13f   :  { %587 = vrot.lane.b32.xlu1 %v7260_v40, %s7128_s6  ;;  %6498 = vmatprep.subr.mxu1 %v8238_v36 }
 0x141   :  { %6491 = vmatmul.mubr.msk.f32.vlgmr.msra.gmra.mxu1 %vm741_vm2, %v7260_v40  ;;  %613 = vrot.lane.b32.xlu0 %v7276_v45, %s7127_s4 }
 0x142   :  { %6500 = vmatprep.mubr.msk.f32.mxu1 %vm7126_vm1, %v8238_v36 }
 0x143   :  { %631 = vrot.lane.b32.xlu1 %v7270_v43, %s7128_s6 }
 0x145   :  { %629 = vrot.lane.b32.xlu0 %v7276_v45, %s7128_s6 }
 0x147   :  { %619 = vrot.lane.b32.xlu1 %v7282_v46, %s7127_s4 }
 0x149   :  { %617 = vrot.lane.b32.xlu0 %v7289_v48, %s7127_s4 }
 0x14b   :  { %635 = vrot.lane.b32.xlu1 %v7282_v46, %s7128_s6 }
 0x14d   :  { %633 = vrot.lane.b32.xlu0 %v7289_v48, %s7128_s6 }
 0x14f   :  { %623 = vrot.lane.b32.xlu1 %v7299_v49, %s7127_s4 }
 0x151   :  { %621 = vrot.lane.b32.xlu0 %v389_v50, %s7127_s4 }
 0x153   :  { %639 = vrot.lane.b32.xlu1 %v7299_v49, %s7128_s6 }
 0x155   :  { %637 = vrot.lane.b32.xlu0 %v389_v50, %s7128_s6 }
 0x157   :  { %627 = vrot.lane.b32.xlu1 %v6432_v51, %s7127_s4 }
 0x159   :  { %625 = vrot.lane.b32.xlu0 %v399_v52, %s7127_s4 }
 0x15b   :  { %643 = vrot.lane.b32.xlu1 %v6432_v51, %s7128_s6 }
 0x15d   :  { %645 = vrot.lane.b32.xlu0 %v7276_v45, %s7129_s17 }
 0x15f   :  { %647 = vrot.lane.b32.xlu1 %v7270_v43, %s7129_s17 }
 0x161   :  { %589 = vrot.lane.b32.xlu0 %v7264_v41, %s7129_s17 }
 0x163   :  { %591 = vrot.lane.b32.xlu1 %v7250_v37, %s7129_s17 }
 0x165   :  { %649 = vrot.lane.b32.xlu0 %v7289_v48, %s7129_s17 }
 0x167   :  { %651 = vrot.lane.b32.xlu1 %v7282_v46, %s7129_s17 }
 0x169   :  { %641 = vrot.lane.b32.xlu0 %v399_v52, %s7128_s6 }
 0x16b   :  { %595 = vrot.lane.b32.xlu1 %v7274_v44, %s7129_s17 }
 0x16d   :  { %593 = vrot.lane.b32.xlu0 %v7287_v47, %s7129_s17 }
 0x16f   :  { %655 = vrot.lane.b32.xlu1 %v7299_v49, %s7129_s17 }
 0x171   :  { %653 = vrot.lane.b32.xlu0 %v389_v50, %s7129_s17 }
 0x173   :  { %599 = vrot.lane.b32.xlu1 %v7252_v38, %s7129_s17 }
 0x175   :  { %597 = vrot.lane.b32.xlu0 %v7256_v39, %s7129_s17 }
 0x177   :  { %659 = vrot.lane.b32.xlu1 %v6432_v51, %s7129_s17 }
 0x179   :  { %657 = vrot.lane.b32.xlu0 %v399_v52, %s7129_s17 }
 0x17b   :  { %603 = vrot.lane.b32.xlu1 %v7260_v40, %s7129_s17 }
 0x17d   :  { %601 = vrot.lane.b32.xlu0 %v7266_v42, %s7129_s17 }
 0x17f   :  { %669 = vrot.lane.b32.xlu1 %v7410_v54, %s7127_s4 }
 0x181   :  { %671 = vrot.lane.b32.xlu0 %v7405_v53, %s7127_s4 }
 0x183   :  { %673 = vrot.lane.b32.xlu1 %v7420_v56, %s7127_s4 }
 0x185   :  { %675 = vrot.lane.b32.xlu0 %v7415_v55, %s7127_s4 }
 0x187   :  { %677 = vrot.lane.b32.xlu1 %v7432_v58, %s7127_s4 }
 0x189   :  { %679 = vrot.lane.b32.xlu0 %v7426_v57, %s7127_s4 }
 0x18b   :  { %693 = vrot.lane.b32.xlu1 %v7410_v54, %s7128_s6 }
 0x18d   :  { %683 = vrot.lane.b32.xlu0 %v7440_v59, %s7127_s4 }
 0x18f   :  { %697 = vrot.lane.b32.xlu1 %v7420_v56, %s7128_s6 }
 0x190   :  { %v560_v60 = vpop.permute.xlu1 %559 }
 0x191   :  { %695 = vrot.lane.b32.xlu0 %v7405_v53, %s7128_s6 }
 0x192   :  { %v566_v61 = vpop.permute.xlu0 %565 }
 0x193   :  { %701 = vrot.lane.b32.xlu1 %v7432_v58, %s7128_s6 }
 0x194   :  { %v568_v62 = vpop.permute.xlu1 %567 }
 0x195   :  { %699 = vrot.lane.b32.xlu0 %v7415_v55, %s7128_s6 }
 0x196   :  { %v7454_v63 = vpop.permute.xlu0 %573 }
 0x197   :  { %703 = vrot.lane.b32.xlu1 %v7426_v57, %s7128_s6 }
 0x198   :  { %v7460_v1 = vpop.permute.xlu1 %575 }
 0x199   :  { %705 = vrot.lane.b32.xlu0 %v7456_v0, %s7128_s6 }
 0x19a   :  { %v7464_v2 = vpop.permute.xlu0 %581 }
 0x19b   :  { %707 = vrot.lane.b32.xlu1 %v7440_v59, %s7128_s6 }
 0x19c   :  { %v7468_v3 = vpop.permute.xlu1 %583 }
 0x19d   :  { %717 = vrot.lane.b32.xlu0 %v7410_v54, %s7129_s17 }
 0x19e   :  { %v562_v4 = vpop.permute.xlu0 %561 }
 0x19f   :  { %681 = vrot.lane.b32.xlu1 %v7456_v0, %s7127_s4 }
 0x1a0   :  { %v558_v5 = vpop.permute.xlu1 %557 }
 0x1a1   :  { %721 = vrot.lane.b32.xlu0 %v7420_v56, %s7129_s17 }
 0x1a2   :  { %v570_v6 = vpop.permute.xlu0 %569 }
 0x1a3   :  { %719 = vrot.lane.b32.xlu1 %v7405_v53, %s7129_s17 }
 0x1a4   :  { %v564_v7 = vpop.permute.xlu1 %563 }
 0x1a7   :  { %v7478_v8 = vpop.permute.xlu0 %577  ;;  %723 = vrot.lane.b32.xlu1 %v7415_v55, %s7129_s17 }
 0x1a9   :  { %v572_v9 = vpop.permute.xlu1 %571 }
 0x1ab   :  { %v7482_v10 = vpop.permute.xlu0 %585 }
 0x1ad   :  { %v7484_v11 = vpop.permute.xlu1 %579 }
 0x1af   :  { %v616_v12 = vpop.permute.xlu0 %615 }
 0x1b0   :  { %6499 = vmatpush3.xpose.msk.msra.mxu1 %vm741_vm2, %v616_v12 }
 0x1b1   :  { %v7487_v13 = vpop.permute.xlu1 %587  ;;  %6508 = vmatprep.subr.mxu1 %v8238_v36 }
 0x1b3   :  { %v614_v14 = vpop.permute.xlu0 %613  ;;  %6501 = vmatmul.mubr.msk.f32.vlgmr.msra.gmra.mxu1 %vm741_vm2, %v560_v60 }
 0x1b4   :  { %6494 = vmatpush3.xpose.msk.msra.mxu0 %vm741_vm2, %v614_v14  ;;  %6510 = vmatprep.mubr.msk.f32.mxu1 %vm7126_vm1, %v8238_v36 }
 0x1b5   :  { %v632_v15 = vpop.permute.xlu1 %631  ;;  %6503 = vmatprep.subr.mxu0 %v8238_v36 }
 0x1b7   :  { %6496 = vmatmul.mubr.msk.f32.vlgmr.msra.gmra.mxu0 %vm741_vm2, %v558_v5  ;;  %v630_v16 = vpop.permute.xlu0 %629 }
 0x1b8   :  { %6505 = vmatprep.mubr.msk.f32.mxu0 %vm7126_vm1, %v8238_v36 }
 0x1b9   :  { %v620_v17 = vpop.permute.xlu1 %619 }
 0x1ba   :  { %6509 = vmatpush3.xpose.msk.msra.mxu1 %vm741_vm2, %v620_v17 }
 0x1bb   :  { %v618_v18 = vpop.permute.xlu0 %617  ;;  %6518 = vmatprep.subr.mxu1 %v8238_v36 }
 0x1bc   :  { %6504 = vmatpush3.xpose.msk.msra.mxu0 %vm741_vm2, %v618_v18 }
 0x1bd   :  { %v636_v19 = vpop.permute.xlu1 %635  ;;  %6511 = vmatmul.mubr.msk.f32.vlgmr.msra.gmra.mxu1 %vm741_vm2, %v564_v7  ;;  %6513 = vmatprep.subr.mxu0 %v8238_v36 }
 0x1be   :  { %6520 = vmatprep.mubr.msk.f32.mxu1 %vm7126_vm1, %v8238_v36 }
 0x1bf   :  { %6506 = vmatmul.mubr.msk.f32.vlgmr.msra.gmra.mxu0 %vm741_vm2, %v562_v4  ;;  %v634_v20 = vpop.permute.xlu0 %633 }
 0x1c0   :  { %6515 = vmatprep.mubr.msk.f32.mxu0 %vm7126_vm1, %v8238_v36 }
 0x1c1   :  { %v624_v21 = vpop.permute.xlu1 %623 }
 0x1c2   :  { %6519 = vmatpush3.xpose.msk.msra.mxu1 %vm741_vm2, %v624_v21 }
 0x1c3   :  { %v622_v22 = vpop.permute.xlu0 %621  ;;  %6528 = vmatprep.subr.mxu1 %v8238_v36 }
 0x1c4   :  { %6514 = vmatpush3.xpose.msk.msra.mxu0 %vm741_vm2, %v622_v22 }
 0x1c5   :  { %v640_v23 = vpop.permute.xlu1 %639  ;;  %6521 = vmatmul.mubr.msk.f32.vlgmr.msra.gmra.mxu1 %vm741_vm2, %v568_v62  ;;  %6523 = vmatprep.subr.mxu0 %v8238_v36 }
 0x1c6   :  { %6530 = vmatprep.mubr.msk.f32.mxu1 %vm7126_vm1, %v8238_v36 }
 0x1c7   :  { %6516 = vmatmul.mubr.msk.f32.vlgmr.msra.gmra.mxu0 %vm741_vm2, %v566_v61  ;;  %v638_v24 = vpop.permute.xlu0 %637 }
 0x1c8   :  { %6525 = vmatprep.mubr.msk.f32.mxu0 %vm7126_vm1, %v8238_v36 }
 0x1c9   :  { %v628_v25 = vpop.permute.xlu1 %627 }
 0x1ca   :  { %6529 = vmatpush3.xpose.msk.msra.mxu1 %vm741_vm2, %v628_v25 }
 0x1cb   :  { %v626_v26 = vpop.permute.xlu0 %625  ;;  %6538 = vmatprep.subr.mxu1 %v8238_v36 }
 0x1cc   :  { %6524 = vmatpush3.xpose.msk.msra.mxu0 %vm741_vm2, %v626_v26 }
 0x1cd   :  { %v644_v27 = vpop.permute.xlu1 %643  ;;  %6531 = vmatmul.mubr.msk.f32.vlgmr.msra.gmra.mxu1 %vm741_vm2, %v572_v9  ;;  %6533 = vmatprep.subr.mxu0 %v8238_v36 }
 0x1ce   :  { %6539 = vmatpush3.xpose.msk.msra.mxu1 %vm741_vm2, %v632_v15  ;;  %6540 = vmatprep.mubr.msk.f32.mxu1 %vm7126_vm1, %v8238_v36 }
 0x1cf   :  { %6526 = vmatmul.mubr.msk.f32.vlgmr.msra.gmra.mxu0 %vm741_vm2, %v570_v6  ;;  %v646_v28 = vpop.permute.xlu0 %645  ;;  %6548 = vmatprep.subr.mxu1 %v8238_v36 }
 0x1d0   :  { %6534 = vmatpush3.xpose.msk.msra.mxu0 %vm741_vm2, %v630_v16  ;;  %6535 = vmatprep.mubr.msk.f32.mxu0 %vm7126_vm1, %v8238_v36 }
 0x1d1   :  { %v648_v29 = vpop.permute.xlu1 %647  ;;  %6541 = vmatmul.mubr.msk.f32.vlgmr.msra.gmra.mxu1 %vm741_vm2, %v7460_v1  ;;  %6543 = vmatprep.subr.mxu0 %v8238_v36 }
 0x1d2   :  { %6549 = vmatpush3.xpose.msk.msra.mxu1 %vm741_vm2, %v636_v19  ;;  %6550 = vmatprep.mubr.msk.f32.mxu1 %vm7126_vm1, %v8238_v36 }
 0x1d3   :  { %6536 = vmatmul.mubr.msk.f32.vlgmr.msra.gmra.mxu0 %vm741_vm2, %v7454_v63  ;;  %v590_v30 = vpop.permute.xlu0 %589  ;;  %6558 = vmatprep.subr.mxu1 %v8238_v36 }
 0x1d4   :  { %6544 = vmatpush3.xpose.msk.msra.mxu0 %vm741_vm2, %v634_v20  ;;  %6545 = vmatprep.mubr.msk.f32.mxu0 %vm7126_vm1, %v8238_v36 }
 0x1d5   :  { %v592_v31 = vpop.permute.xlu1 %591  ;;  %6551 = vmatmul.mubr.msk.f32.vlgmr.msra.gmra.mxu1 %vm741_vm2, %v7484_v11  ;;  %6553 = vmatprep.subr.mxu0 %v8238_v36 }
 0x1d6   :  { %6559 = vmatpush3.xpose.msk.msra.mxu1 %vm741_vm2, %v640_v23  ;;  %6560 = vmatprep.mubr.msk.f32.mxu1 %vm7126_vm1, %v8238_v36 }
 0x1d7   :  { %6546 = vmatmul.mubr.msk.f32.vlgmr.msra.gmra.mxu0 %vm741_vm2, %v7478_v8  ;;  %v650_v32 = vpop.permute.xlu0 %649  ;;  %6568 = vmatprep.subr.mxu1 %v8238_v36 }
 0x1d8   :  { %6554 = vmatpush3.xpose.msk.msra.mxu0 %vm741_vm2, %v638_v24  ;;  %6555 = vmatprep.mubr.msk.f32.mxu0 %vm7126_vm1, %v8238_v36 }
 0x1d9   :  { %v652_v33 = vpop.permute.xlu1 %651  ;;  %6561 = vmatmul.mubr.msk.f32.vlgmr.msra.gmra.mxu1 %vm741_vm2, %v7468_v3  ;;  %6563 = vmatprep.subr.mxu0 %v8238_v36 }
 0x1da   :  { %6569 = vmatpush3.xpose.msk.msra.mxu1 %vm741_vm2, %v644_v27  ;;  %6570 = vmatprep.mubr.msk.f32.mxu1 %vm7126_vm1, %v8238_v36 }
 0x1db   :  { %6556 = vmatmul.mubr.msk.f32.vlgmr.msra.gmra.mxu0 %vm741_vm2, %v7464_v2  ;;  %v642_v34 = vpop.permute.xlu0 %641  ;;  %6578 = vmatprep.subr.mxu1 %v8238_v36 }
 0x1dc   :  { %6564 = vmatpush3.xpose.msk.msra.mxu0 %vm741_vm2, %v642_v34  ;;  %6565 = vmatprep.mubr.msk.f32.mxu0 %vm7126_vm1, %v8238_v36 }
 0x1dd   :  { %v596_v35 = vpop.permute.xlu1 %595  ;;  %6571 = vmatmul.mubr.msk.f32.vlgmr.msra.gmra.mxu1 %vm741_vm2, %v7487_v13  ;;  %6573 = vmatprep.subr.mxu0 %v8238_v36 }
 0x1de   :  { %6579 = vmatpush3.xpose.msk.msra.mxu1 %vm741_vm2, %v648_v29  ;;  %6580 = vmatprep.mubr.msk.f32.mxu1 %vm7126_vm1, %v8238_v36 }
 0x1df   :  { %6566 = vmatmul.mubr.msk.f32.vlgmr.msra.gmra.mxu0 %vm741_vm2, %v7482_v10  ;;  %v594_v37 = vpop.permute.xlu0 %593  ;;  %6588 = vmatprep.subr.mxu1 %v8238_v36 }
 0x1e0   :  { %6574 = vmatpush3.xpose.msk.msra.mxu0 %vm741_vm2, %v646_v28  ;;  %6575 = vmatprep.mubr.msk.f32.mxu0 %vm7126_vm1, %v8238_v36 }
 0x1e1   :  { %v656_v38 = vpop.permute.xlu1 %655  ;;  %6581 = vmatmul.mubr.msk.f32.vlgmr.msra.gmra.mxu1 %vm741_vm2, %v592_v31  ;;  %6583 = vmatprep.subr.mxu0 %v8238_v36 }
 0x1e2   :  { %6589 = vmatpush3.xpose.msk.msra.mxu1 %vm741_vm2, %v652_v33  ;;  %6590 = vmatprep.mubr.msk.f32.mxu1 %vm7126_vm1, %v8238_v36 }
 0x1e3   :  { %6576 = vmatmul.mubr.msk.f32.vlgmr.msra.gmra.mxu0 %vm741_vm2, %v590_v30  ;;  %v654_v39 = vpop.permute.xlu0 %653  ;;  %6598 = vmatprep.subr.mxu1 %v8238_v36 }
 0x1e4   :  { %6584 = vmatpush3.xpose.msk.msra.mxu0 %vm741_vm2, %v650_v32  ;;  %6585 = vmatprep.mubr.msk.f32.mxu0 %vm7126_vm1, %v8238_v36 }
 0x1e5   :  { %v600_v40 = vpop.permute.xlu1 %599  ;;  %6591 = vmatmul.mubr.msk.f32.vlgmr.msra.gmra.mxu1 %vm741_vm2, %v596_v35  ;;  %6593 = vmatprep.subr.mxu0 %v8238_v36 }
 0x1e6   :  { %6599 = vmatpush3.xpose.msk.msra.mxu1 %vm741_vm2, %v656_v38  ;;  %6600 = vmatprep.mubr.msk.f32.mxu1 %vm7126_vm1, %v8238_v36 }
 0x1e7   :  { %6586 = vmatmul.mubr.msk.f32.vlgmr.msra.gmra.mxu0 %vm741_vm2, %v594_v37  ;;  %v598_v41 = vpop.permute.xlu0 %597  ;;  %6608 = vmatprep.subr.mxu1 %v8238_v36 }
 0x1e8   :  { %6594 = vmatpush3.xpose.msk.msra.mxu0 %vm741_vm2, %v654_v39  ;;  %6595 = vmatprep.mubr.msk.f32.mxu0 %vm7126_vm1, %v8238_v36 }
 0x1e9   :  { %v660_v42 = vpop.permute.xlu1 %659  ;;  %6601 = vmatmul.mubr.msk.f32.vlgmr.msra.gmra.mxu1 %vm741_vm2, %v600_v40  ;;  %6603 = vmatprep.subr.mxu0 %v8238_v36 }
 0x1ea   :  { %6609 = vmatpush3.xpose.msk.msra.mxu1 %vm741_vm2, %v660_v42  ;;  %6610 = vmatprep.mubr.msk.f32.mxu1 %vm7126_vm1, %v8238_v36 }
 0x1eb   :  { %6596 = vmatmul.mubr.msk.f32.vlgmr.msra.gmra.mxu0 %vm741_vm2, %v598_v41  ;;  %v658_v43 = vpop.permute.xlu0 %657  ;;  %6618 = vmatprep.subr.mxu1 %v8238_v36 }
 0x1ec   :  { %v7606_v44 = vpop.f32.mrf.mxu1  ;;  %6604 = vmatpush3.xpose.msk.msra.mxu0 %vm741_vm2, %v658_v43  ;;  %6605 = vmatprep.mubr.msk.f32.mxu0 %vm7126_vm1, %v8238_v36 }
 0x1ed   :  { %v604_v45 = vpop.permute.xlu1 %603  ;;  %v3110_v46 = vsel %vm741_vm2, %v7606_v44, -inf  ;;  %6613 = vmatprep.subr.mxu0 %v8238_v36 }
 0x1ee   :  { %v6457_v47 = vpop.f32.mrf.mxu1  ;;  %6611 = vmatmul.mubr.msk.f32.vlgmr.msra.gmra.mxu1 %vm741_vm2, %v604_v45  ;;  %3111 = vmax.xlane.f32.xlu0 %v3110_v46 }
 0x1ef   :  { %6619 = vmatpush3.msra.mxu1 %v7405_v53  ;;  %v602_v48 = vpop.permute.xlu0 %601  ;;  %6620 = vmatprep.mubr.msk.f32.mxu1 %vm7126_vm1, %v8238_v36 }
 0x1f0   :  { %v7618_v49 = vpop.f32.mrf.mxu1  ;;  %6606 = vmatmul.mubr.msk.f32.vlgmr.msra.gmra.mxu0 %vm741_vm2, %v602_v48  ;;  %6628 = vmatprep.subr.mxu1 %v8238_v36 }
 0x1f1   :  { %6614 = vmatpush3.msra.mxu0 %v7410_v54  ;;  %v3113_v50 = vsel %vm741_vm2, %v7618_v49, -inf  ;;  %6615 = vmatprep.mubr.msk.f32.mxu0 %vm7126_vm1, %v8238_v36  ;;  %v7688_v35 = vpop.permute.xlu1 %669 }
 0x1f2   :  { %v6462_v51 = vpop.f32.mrf.mxu1  ;;  %3114 = vmax.xlane.f32.xlu1 %v3113_v50  ;;  %6623 = vmatprep.subr.mxu0 %v8238_v36 }
 0x1f3   :  { %v7652_v12 = vpop.permute.xlu0 %671 }
 0x1f4   :  { %v7628_v52 = vpop.f32.mrf.mxu1  ;;  %v7630_v53 = vpop.f32.mrf.mxu0 }
 0x1f5   :  { %v3116_v60 = vsel %vm741_vm2, %v7628_v52, -inf  ;;  %v3122_v54 = vsel %vm741_vm2, %v7630_v53, -inf  ;;  %v7696_v41 = vpop.permute.xlu1 %673 }
 0x1f6   :  { %v6467_v61 = vpop.f32.mrf.mxu1  ;;  %3117 = vmax.xlane.f32.xlu0 %v3116_v60  ;;  %3123 = vmax.xlane.f32.xlu1 %v3122_v54  ;;  %v6477_v62 = vpop.f32.mrf.mxu0 }
 0x1f7   :  { %v7654_v13 = vpop.permute.xlu0 %675 }
 0x1f8   :  { %v7636_v63 = vpop.f32.mrf.mxu0 }
 0x1f9   :  { %v7638_v1 = vpop.f32.mrf.mxu1  ;;  %v3128_v2 = vsel %vm741_vm2, %v7636_v63, -inf  ;;  %v7712_v61 = vpop.permute.xlu1 %677 }
 0x1fa   :  { %v3119_v3 = vsel %vm741_vm2, %v7638_v1, -inf  ;;  %3129 = vmax.xlane.f32.xlu1 %v3128_v2  ;;  %v6487_v4 = vpop.f32.mrf.mxu0 }
 0x1fb   :  { %v6472_v5 = vpop.f32.mrf.mxu1  ;;  %3120 = vmax.xlane.f32.xlu0 %v3119_v3  ;;  %v7656_v14 = vpop.permute.xlu0 %679 }
 0x1fd   :  { %v7644_v6 = vpop.f32.mrf.mxu1 }
 0x1fe   :  { %v3125_v7 = vsel %vm741_vm2, %v7644_v6, -inf }
 0x1ff   :  { %v6482_v8 = vpop.f32.mrf.mxu1  ;;  %3126 = vmax.xlane.f32.xlu0 %v3125_v7  ;;  %v7658_v15 = vpop.permute.xlu0 %683 }
 0x201   :  { %v7648_v9 = vpop.f32.mrf.mxu1 }
 0x202   :  { %v3131_v10 = vsel %vm741_vm2, %v7648_v9, -inf }
 0x203   :  { %v6492_v11 = vpop.f32.mrf.mxu1  ;;  %3132 = vmax.xlane.f32.xlu0 %v3131_v10  ;;  %v7666_v20 = vpop.permute.xlu0 %695 }
 0x207   :  { %v7672_v24 = vpop.permute.xlu0 %699 }
 0x208   :  { %8240 = vst [vmem:[#allocation20_spill] sm:$0xff] %v7672_v24 }
 0x20b   :  { %v7680_v30 = vpop.permute.xlu0 %705 }
 0x20c   :  { %8241 = vst [vmem:[#allocation21_spill] sm:$0xff] %v7680_v30 }
 0x20f   :  { %v7692_v39 = vpop.permute.xlu0 %717 }
 0x210   :  { %8242 = vst [vmem:[#allocation22_spill] sm:$0xff] %v7692_v39 }
 0x213   :  { %v7702_v46 = vpop.permute.xlu0 %721 }
 0x214   :  { %8243 = vst [vmem:[#allocation23_spill] sm:$0xff] %v7702_v46 }
 0x273   :  { %v7660_v16 = vpop.f32.mrf.mxu1 }
 0x274   :  { %v3137_v17 = vsel %vm741_vm2, %v7660_v16, -inf }
 0x275   :  { %v6502_v18 = vpop.f32.mrf.mxu1  ;;  %3138 = vmax.xlane.f32.xlu0 %v3137_v17 }
 0x277   :  { %v7664_v19 = vpop.f32.mrf.mxu0  ;;  %v3112_v62 = vpop.xlane.xlu0 %3111 }
 0x278   :  { %v3134_v21 = vsel %vm741_vm2, %v7664_v19, -inf  ;;  %v3206_v10 = vsub.f32 %v7606_v44, %v3112_v62 }
 0x279   :  { %3135 = vmax.xlane.f32.xlu1 %v3134_v21  ;;  %v6497_v22 = vpop.f32.mrf.mxu0  ;;  %v7727_v21 = vpop.permute.xlu1 %693 }
 0x27d   :  { %v7670_v23 = vpop.f32.mrf.mxu1 }
 0x27e   :  { %v3143_v25 = vsel %vm741_vm2, %v7670_v23, -inf }
 0x27f   :  { %v6512_v26 = vpop.f32.mrf.mxu1  ;;  %3144 = vmax.xlane.f32.xlu0 %v3143_v25  ;;  %v7676_v27 = vpop.f32.mrf.mxu0 }
 0x280   :  { %v3140_v28 = vsel %vm741_vm2, %v7676_v27, -inf }
 0x281   :  { %3141 = vmax.xlane.f32.xlu1 %v3140_v28  ;;  %v6507_v29 = vpop.f32.mrf.mxu0  ;;  %v3238_v28 = vmul.f32 1.442695, %v3206_v10 }
 0x283   :  { %6818 = vpow2.f32 %v3238_v28 }
 0x285   :  { %v7682_v31 = vpop.f32.mrf.mxu1 }
 0x286   :  { %v3149_v32 = vsel %vm741_vm2, %v7682_v31, -inf }
 0x287   :  { %v6522_v33 = vpop.f32.mrf.mxu1  ;;  %3150 = vmax.xlane.f32.xlu0 %v3149_v32  ;;  %v7686_v34 = vpop.f32.mrf.mxu0 }
 0x288   :  { %v3146_v37 = vsel %vm741_vm2, %v7686_v34, -inf }
 0x289   :  { %3147 = vmax.xlane.f32.xlu1 %v3146_v37  ;;  %v6517_v38 = vpop.f32.mrf.mxu0 }
 0x28d   :  { %v7694_v40 = vpop.f32.mrf.mxu1 }
 0x28e   :  { %v3155_v42 = vsel %vm741_vm2, %v7694_v40, -inf }
 0x28f   :  { %v6532_v43 = vpop.f32.mrf.mxu1  ;;  %3156 = vmax.xlane.f32.xlu0 %v3155_v42  ;;  %v7700_v45 = vpop.f32.mrf.mxu0 }
 0x290   :  { %v3152_v47 = vsel %vm741_vm2, %v7700_v45, -inf  ;;  %v7741_v42 = vpop.permute.xlu1 %697 }
 0x291   :  { %v7706_v48 = vpop.f32.mrf.mxu1  ;;  %3153 = vmax.xlane.f32.xlu1 %v3152_v47  ;;  %v6527_v50 = vpop.f32.mrf.mxu0  ;;  %8244 = vst [vmem:[#allocation24_spill] sm:$0xff] %v7741_v42 }
 0x292   :  { %v3161_v51 = vsel %vm741_vm2, %v7706_v48, -inf }
 0x293   :  { %v6542_v60 = vpop.f32.mrf.mxu1  ;;  %3162 = vmax.xlane.f32.xlu0 %v3161_v51  ;;  %v7710_v54 = vpop.f32.mrf.mxu0 }
 0x294   :  { %v3158_v2 = vsel %vm741_vm2, %v7710_v54, -inf }
 0x295   :  { %v7716_v3 = vpop.f32.mrf.mxu1  ;;  %3159 = vmax.xlane.f32.xlu1 %v3158_v2  ;;  %v6537_v4 = vpop.f32.mrf.mxu0 }
 0x296   :  { %v3167_v5 = vsel %vm741_vm2, %v7716_v3, -inf }
 0x297   :  { %v6552_v7 = vpop.f32.mrf.mxu1  ;;  %3168 = vmax.xlane.f32.xlu0 %v3167_v5  ;;  %v7720_v8 = vpop.f32.mrf.mxu0 }
 0x298   :  { %v3164_v11 = vsel %vm741_vm2, %v7720_v8, -inf  ;;  %v7755_v7 = vpop.permute.xlu1 %701 }
 0x299   :  { %v7725_v17 = vpop.f32.mrf.mxu1  ;;  %3165 = vmax.xlane.f32.xlu1 %v3164_v11  ;;  %v6547_v18 = vpop.f32.mrf.mxu0  ;;  %8245 = vst [vmem:[#allocation25_spill] sm:$0xff] %v7755_v7 }
 0x29a   :  { %v3173_v22 = vsel %vm741_vm2, %v7725_v17, -inf }
 0x29b   :  { %v6562_v25 = vpop.f32.mrf.mxu1  ;;  %3174 = vmax.xlane.f32.xlu0 %v3173_v22  ;;  %v7731_v26 = vpop.f32.mrf.mxu0 }
 0x29c   :  { %v3170_v44 = vsel %vm741_vm2, %v7731_v26, -inf }
 0x29d   :  { %v7735_v29 = vpop.f32.mrf.mxu1  ;;  %3171 = vmax.xlane.f32.xlu1 %v3170_v44  ;;  %v6557_v32 = vpop.f32.mrf.mxu0 }
 0x29e   :  { %v3179_v33 = vsel %vm741_vm2, %v7735_v29, -inf }
 0x29f   :  { %v6572_v37 = vpop.f32.mrf.mxu1  ;;  %3180 = vmax.xlane.f32.xlu0 %v3179_v33  ;;  %v7739_v38 = vpop.f32.mrf.mxu0 }
 0x2a0   :  { %v3176_v43 = vsel %vm741_vm2, %v7739_v38, -inf }
 0x2a1   :  { %v7745_v47 = vpop.f32.mrf.mxu1  ;;  %3177 = vmax.xlane.f32.xlu1 %v3176_v43  ;;  %v6567_v50 = vpop.f32.mrf.mxu0 }
 0x2a2   :  { %v3185_v51 = vsel %vm741_vm2, %v7745_v47, -inf  ;;  %v7771_v43 = vpop.eup %6818  ;;  %v7773_v50 = vpop.permute.xlu1 %703 }
 0x2a3   :  { %v6582_v60 = vpop.f32.mrf.mxu1  ;;  %3186 = vmax.xlane.f32.xlu0 %v3185_v51  ;;  %v7749_v62 = vpop.f32.mrf.mxu0  ;;  %8246 = vst [vmem:[#allocation26_spill] sm:$0xff] %v7773_v50 }
 0x2a4   :  { %v3182_v2 = vsel %vm741_vm2, %v7749_v62, -inf }
 0x2a5   :  { %v7753_v4 = vpop.f32.mrf.mxu1  ;;  %3183 = vmax.xlane.f32.xlu1 %v3182_v2  ;;  %v6577_v5 = vpop.f32.mrf.mxu0 }
 0x2a6   :  { %v3191_v10 = vsel %vm741_vm2, %v7753_v4, -inf }
 0x2a7   :  { %v6592_v11 = vpop.f32.mrf.mxu1  ;;  %3192 = vmax.xlane.f32.xlu0 %v3191_v10  ;;  %v7759_v18 = vpop.f32.mrf.mxu0 }
 0x2a8   :  { %v3188_v22 = vsel %vm741_vm2, %v7759_v18, -inf  ;;  %v3302_v11 = vsel %vm741_vm2, %v7771_v43, 0.0 }
 0x2a9   :  { %v7763_v25 = vpop.f32.mrf.mxu1  ;;  %3189 = vmax.xlane.f32.xlu1 %v3188_v22  ;;  %v6587_v28 = vpop.f32.mrf.mxu0 }
 0x2aa   :  { %v3197_v44 = vsel %vm741_vm2, %v7763_v25, -inf  ;;  %v7783_v28 = vpop.permute.xlu1 %707 }
 0x2ab   :  { %v6602_v32 = vpop.f32.mrf.mxu1  ;;  %3198 = vmax.xlane.f32.xlu0 %v3197_v44  ;;  %v7767_v33 = vpop.f32.mrf.mxu0  ;;  %8247 = vst [vmem:[#allocation27_spill] sm:$0xff] %v7783_v28 }
 0x2ac   :  { %v3194_v37 = vsel %vm741_vm2, %v7767_v33, -inf }
 0x2ad   :  { %3195 = vmax.xlane.f32.xlu1 %v3194_v37  ;;  %v6597_v51 = vpop.f32.mrf.mxu0 }
 0x2ae   :  { %v7775_v60 = vpop.f32.mrf.mxu1  ;;  %v7787_v32 = vpop.permute.xlu1 %681 }
 0x2af   :  { %v3203_v2 = vsel %vm741_vm2, %v7775_v60, -inf  ;;  %v3118_v51 = vpop.xlane.xlu0 %3117 }
 0x2b0   :  { %v6612_v5 = vpop.f32.mrf.mxu1  ;;  %3204 = vmax.xlane.f32.xlu0 %v3203_v2  ;;  %v7779_v10 = vpop.f32.mrf.mxu0 }
 0x2b1   :  { %3303 = vadd.xlane.f32.xlu1 %v3302_v11  ;;  %v3200_v44 = vsel %vm741_vm2, %v7779_v10, -inf }
 0x2b2   :  { %v6607_v22 = vpop.f32.mrf.mxu0  ;;  %v7789_v37 = vpop.permute.xlu1 %719 }
 0x2b3   :  { %8248 = vst [vmem:[#allocation28_spill] sm:$0xff] %v7789_v37  ;;  %v3121_v11 = vpop.xlane.xlu0 %3120  ;;  %v3208_v37 = vsub.f32 %v7628_v52, %v3118_v51 }
 0x2b4   :  { %v3209_v39 = vsub.f32 %v7638_v1, %v3121_v11 }
 0x2b5   :  { %3201 = vmax.xlane.f32.xlu1 %v3200_v44  ;;  %v3242_v28 = vmul.f32 1.442695, %v3208_v37 }
 0x2b6   :  { %v7791_v5 = vpop.permute.xlu1 %723  ;;  %v3244_v30 = vmul.f32 1.442695, %v3209_v39 }
 0x2b7   :  { %8249 = vst [vmem:[#allocation29_spill] sm:$0xff] %v7791_v5  ;;  %v3127_v36 = vpop.xlane.xlu0 %3126 }
 0x2b8   :  { %v3211_v5 = vsub.f32 %v7644_v6, %v3127_v36 }
 0x2ba   :  { %v3115_v2 = vpop.xlane.xlu1 %3114  ;;  %v3248_v24 = vmul.f32 1.442695, %v3211_v5 }
 0x2bb   :  { %v3207_v22 = vsub.f32 %v7618_v49, %v3115_v2  ;;  %v3133_v50 = vpop.xlane.xlu0 %3132 }
 0x2bc   :  { %v3213_v49 = vsub.f32 %v7648_v9, %v3133_v50 }
 0x2bd   :  { %v3240_v46 = vmul.f32 1.442695, %v3207_v22 }
 0x2be   :  { %v3124_v44 = vpop.xlane.xlu1 %3123  ;;  %v3252_v1 = vmul.f32 1.442695, %v3213_v49 }
 0x2bf   :  { %6820 = vpow2.f32 %v3240_v46  ;;  %v3210_v7 = vsub.f32 %v7630_v53, %v3124_v44 }
 0x2c0   :  { %6822 = vpow2.f32 %v3244_v30 }
 0x2c1   :  { %6824 = vpow2.f32 %v3242_v28  ;;  %v3246_v2 = vmul.f32 1.442695, %v3210_v7 }
 0x2c2   :  { %v3130_v42 = vpop.xlane.xlu1 %3129  ;;  %6826 = vpow2.f32 %v3248_v24 }
 0x2c3   :  { %v3212_v22 = vsub.f32 %v7636_v63, %v3130_v42  ;;  %6828 = vpow2.f32 %v3246_v2 }
 0x2c4   :  { %6830 = vpow2.f32 %v3252_v1 }
 0x2c5   :  { %v3250_v52 = vmul.f32 1.442695, %v3212_v22 }
 0x2c6   :  { %725 = vrot.lane.b32.xlu0 %v7432_v58, %s7129_s17  ;;  %727 = vrot.lane.b32.xlu1 %v7426_v57, %s7129_s17 }
 0x2c7   :  { %6832 = vpow2.f32 %v3250_v52 }
 0x2cc   :  { %v7804_v39 = vpop.eup %6820 }
 0x2cd   :  { %v3305_v36 = vsel %vm741_vm2, %v7804_v39, 0.0  ;;  %v7808_v53 = vpop.eup %6822 }
 0x2ce   :  { %v7810_v6 = vpop.eup %6824  ;;  %v3311_v9 = vsel %vm741_vm2, %v7808_v53, 0.0 }
 0x2cf   :  { %v7814_v63 = vpop.eup %6826  ;;  %v3308_v24 = vsel %vm741_vm2, %v7810_v6, 0.0 }
 0x2d0   :  { %v7818_v30 = vpop.eup %6828  ;;  %v3317_v46 = vsel %vm741_vm2, %v7814_v63, 0.0 }
 0x2d1   :  { %v7822_v42 = vpop.eup %6830  ;;  %v3314_v7 = vsel %vm741_vm2, %v7818_v30, 0.0 }
 0x2d2   :  { %v3323_v28 = vsel %vm741_vm2, %v7822_v42, 0.0 }
 0x2d4   :  { %v7826_v50 = vpop.eup %6832 }
 0x2d5   :  { %v3320_v37 = vsel %vm741_vm2, %v7826_v50, 0.0 }
 0x2e5   :  { %3306 = vadd.xlane.f32.xlu0 %v3305_v36 }
 0x2e9   :  { %3312 = vadd.xlane.f32.xlu0 %v3311_v9 }
 0x2ea   :  { %3309 = vadd.xlane.f32.xlu1 %v3308_v24 }
 0x2ed   :  { %3318 = vadd.xlane.f32.xlu0 %v3317_v46 }
 0x2ee   :  { %3315 = vadd.xlane.f32.xlu1 %v3314_v7 }
 0x2f1   :  { %3324 = vadd.xlane.f32.xlu0 %v3323_v28 }
 0x2f2   :  { %3321 = vadd.xlane.f32.xlu1 %v3320_v37 }
 0x2fe   :  { %v3139_v51 = vpop.xlane.xlu0 %3138 }
 0x2ff   :  { %v3215_v5 = vsub.f32 %v7660_v16, %v3139_v51 }
 0x301   :  { %v3256_v11 = vmul.f32 1.442695, %v3215_v5 }
 0x302   :  { %v3136_v44 = vpop.xlane.xlu1 %3135 }
 0x303   :  { %6834 = vpow2.f32 %v3256_v11  ;;  %v3214_v49 = vsub.f32 %v7664_v19, %v3136_v44 }
 0x305   :  { %v3254_v2 = vmul.f32 1.442695, %v3214_v49 }
 0x307   :  { %6836 = vpow2.f32 %v3254_v2 }
 0x308   :  { %v3145_v22 = vpop.xlane.xlu0 %3144 }
 0x309   :  { %v3217_v1 = vsub.f32 %v7670_v23, %v3145_v22 }
 0x30a   :  { %v3142_v36 = vpop.xlane.xlu1 %3141 }
 0x30b   :  { %v3260_v52 = vmul.f32 1.442695, %v3217_v1  ;;  %v3216_v9 = vsub.f32 %v7676_v27, %v3142_v36 }
 0x30d   :  { %6838 = vpow2.f32 %v3260_v52  ;;  %v3258_v24 = vmul.f32 1.442695, %v3216_v9 }
 0x30f   :  { %6840 = vpow2.f32 %v3258_v24 }
 0x310   :  { %v7836_v46 = vpop.eup %6834  ;;  %v3151_v16 = vpop.xlane.xlu0 %3150 }
 0x311   :  { %v3219_v7 = vsub.f32 %v7682_v31, %v3151_v16  ;;  %v3329_v19 = vsel %vm741_vm2, %v7836_v46, 0.0 }
 0x312   :  { %3330 = vadd.xlane.f32.xlu0 %v3329_v19  ;;  %v3148_v28 = vpop.xlane.xlu1 %3147 }
 0x313   :  { %v3264_v37 = vmul.f32 1.442695, %v3219_v7  ;;  %v3218_v23 = vsub.f32 %v7686_v34, %v3148_v28 }
 0x314   :  { %v7842_v51 = vpop.eup %6836 }
 0x315   :  { %6842 = vpow2.f32 %v3264_v37  ;;  %v3262_v27 = vmul.f32 1.442695, %v3218_v23  ;;  %v3326_v5 = vsel %vm741_vm2, %v7842_v51, 0.0 }
 0x316   :  { %3327 = vadd.xlane.f32.xlu1 %v3326_v5 }
 0x317   :  { %6844 = vpow2.f32 %v3262_v27 }
 0x318   :  { %v3157_v11 = vpop.xlane.xlu0 %3156 }
 0x319   :  { %v3221_v31 = vsub.f32 %v7694_v40, %v3157_v11 }
 0x31a   :  { %v7847_v44 = vpop.eup %6838  ;;  %v3154_v49 = vpop.xlane.xlu1 %3153 }
 0x31b   :  { %v3268_v2 = vmul.f32 1.442695, %v3221_v31  ;;  %v3220_v22 = vsub.f32 %v7700_v45, %v3154_v49  ;;  %v3335_v34 = vsel %vm741_vm2, %v7847_v44, 0.0 }
 0x31c   :  { %v3163_v1 = vpop.xlane.xlu0 %3162  ;;  %3336 = vadd.xlane.f32.xlu0 %v3335_v34  ;;  %v7852_v52 = vpop.eup %6840 }
 0x31d   :  { %6846 = vpow2.f32 %v3268_v2  ;;  %v3266_v36 = vmul.f32 1.442695, %v3220_v22  ;;  %v3223_v9 = vsub.f32 %v7706_v48, %v3163_v1  ;;  %v3332_v40 = vsel %vm741_vm2, %v7852_v52, 0.0 }
 0x31e   :  { %v3160_v24 = vpop.xlane.xlu1 %3159  ;;  %3333 = vadd.xlane.f32.xlu1 %v3332_v40 }
 0x31f   :  { %6848 = vpow2.f32 %v3266_v36  ;;  %v3272_v16 = vmul.f32 1.442695, %v3223_v9  ;;  %v3222_v7 = vsub.f32 %v7710_v54, %v3160_v24 }
 0x320   :  { %v3169_v45 = vpop.xlane.xlu0 %3168 }
 0x321   :  { %6850 = vpow2.f32 %v3272_v16  ;;  %v3270_v19 = vmul.f32 1.442695, %v3222_v7  ;;  %v3225_v28 = vsub.f32 %v7716_v3, %v3169_v45 }
 0x322   :  { %v7859_v37 = vpop.eup %6842  ;;  %v3166_v23 = vpop.xlane.xlu1 %3165 }
 0x323   :  { %6852 = vpow2.f32 %v3270_v19  ;;  %v3276_v27 = vmul.f32 1.442695, %v3225_v28  ;;  %v3224_v48 = vsub.f32 %v7720_v8, %v3166_v23  ;;  %v3341_v5 = vsel %vm741_vm2, %v7859_v37, 0.0 }
 0x324   :  { %v7864_v11 = vpop.eup %6844  ;;  %v3175_v31 = vpop.xlane.xlu0 %3174  ;;  %3342 = vadd.xlane.f32.xlu0 %v3341_v5 }
 0x325   :  { %6854 = vpow2.f32 %v3276_v27  ;;  %v3274_v54 = vmul.f32 1.442695, %v3224_v48  ;;  %v3227_v49 = vsub.f32 %v7725_v17, %v3175_v31  ;;  %v3338_v3 = vsel %vm741_vm2, %v7864_v11, 0.0 }
 0x326   :  { %v3172_v2 = vpop.xlane.xlu1 %3171  ;;  %3339 = vadd.xlane.f32.xlu1 %v3338_v3 }
 0x327   :  { %6856 = vpow2.f32 %v3274_v54  ;;  %v3280_v22 = vmul.f32 1.442695, %v3227_v49  ;;  %v3226_v8 = vsub.f32 %v7731_v26, %v3172_v2 }
 0x328   :  { %v3181_v34 = vpop.xlane.xlu0 %3180 }
 0x329   :  { %6858 = vpow2.f32 %v3280_v22  ;;  %v3278_v1 = vmul.f32 1.442695, %v3226_v8  ;;  %v3229_v36 = vsub.f32 %v7735_v29, %v3181_v34 }
 0x32a   :  { %v7871_v9 = vpop.eup %6846  ;;  %v3178_v24 = vpop.xlane.xlu1 %3177 }
 0x32b   :  { %6860 = vpow2.f32 %v3278_v1  ;;  %v3284_v40 = vmul.f32 1.442695, %v3229_v36  ;;  %v3228_v17 = vsub.f32 %v7739_v38, %v3178_v24  ;;  %v3347_v16 = vsel %vm741_vm2, %v7871_v9, 0.0 }
 0x32c   :  { %v7876_v7 = vpop.eup %6848  ;;  %v3187_v45 = vpop.xlane.xlu0 %3186  ;;  %3348 = vadd.xlane.f32.xlu0 %v3347_v16 }
 0x32d   :  { %6862 = vpow2.f32 %v3284_v40  ;;  %v3282_v26 = vmul.f32 1.442695, %v3228_v17  ;;  %v3231_v19 = vsub.f32 %v7745_v47, %v3187_v45  ;;  %v3344_v29 = vsel %vm741_vm2, %v7876_v7, 0.0 }
 0x32e   :  { %v7881_v28 = vpop.eup %6850  ;;  %v3184_v23 = vpop.xlane.xlu1 %3183  ;;  %3345 = vadd.xlane.f32.xlu1 %v3344_v29 }
 0x32f   :  { %6864 = vpow2.f32 %v3282_v26  ;;  %v3288_v38 = vmul.f32 1.442695, %v3231_v19  ;;  %v3230_v27 = vsub.f32 %v7749_v62, %v3184_v23  ;;  %v3353_v48 = vsel %vm741_vm2, %v7881_v28, 0.0 }
 0x330   :  { %v7886_v5 = vpop.eup %6852  ;;  %v3193_v31 = vpop.xlane.xlu0 %3192  ;;  %3354 = vadd.xlane.f32.xlu0 %v3353_v48 }
 0x331   :  { %6866 = vpow2.f32 %v3288_v38  ;;  %v3286_v47 = vmul.f32 1.442695, %v3230_v27  ;;  %v3233_v54 = vsub.f32 %v7753_v4, %v3193_v31  ;;  %v3350_v49 = vsel %vm741_vm2, %v7886_v5, 0.0 }
 0x332   :  { %v7891_v3 = vpop.eup %6854  ;;  %v3190_v2 = vpop.xlane.xlu1 %3189  ;;  %3351 = vadd.xlane.f32.xlu1 %v3350_v49 }
 0x333   :  { %6868 = vpow2.f32 %v3286_v47  ;;  %v3292_v62 = vmul.f32 1.442695, %v3233_v54  ;;  %v3232_v22 = vsub.f32 %v7759_v18, %v3190_v2  ;;  %v3359_v8 = vsel %vm741_vm2, %v7891_v3, 0.0 }
 0x334   :  { %v7896_v34 = vpop.eup %6856  ;;  %v3199_v1 = vpop.xlane.xlu0 %3198  ;;  %3360 = vadd.xlane.f32.xlu0 %v3359_v8 }
 0x335   :  { %6870 = vpow2.f32 %v3292_v62  ;;  %v3290_v4 = vmul.f32 1.442695, %v3232_v22  ;;  %v3235_v36 = vsub.f32 %v7763_v25, %v3199_v1  ;;  %v3356_v24 = vsel %vm741_vm2, %v7896_v34, 0.0 }
 0x336   :  { %v7901_v40 = vpop.eup %6858  ;;  %v3196_v17 = vpop.xlane.xlu1 %3195  ;;  %3357 = vadd.xlane.f32.xlu1 %v3356_v24 }
 0x337   :  { %6872 = vpow2.f32 %v3290_v4  ;;  %v3296_v18 = vmul.f32 1.442695, %v3235_v36  ;;  %v3234_v16 = vsub.f32 %v7767_v33, %v3196_v17  ;;  %v3365_v45 = vsel %vm741_vm2, %v7901_v40, 0.0 }
 0x338   :  { %v7906_v26 = vpop.eup %6860  ;;  %3366 = vadd.xlane.f32.xlu0 %v3365_v45 }
 0x339   :  { %6874 = vpow2.f32 %v3296_v18  ;;  %v3294_v19 = vmul.f32 1.442695, %v3234_v16  ;;  %v3205_v25 = vpop.xlane.xlu0 %3204  ;;  %v3362_v29 = vsel %vm741_vm2, %v7906_v26, 0.0 }
 0x33a   :  { %v7910_v23 = vpop.eup %6862  ;;  %v3237_v38 = vsub.f32 %v7775_v60, %v3205_v25  ;;  %v3304_v27 = vpop.xlane.xlu1 %3303  ;;  %3363 = vadd.xlane.f32.xlu1 %v3362_v29 }
 0x33b   :  { %6876 = vpow2.f32 %v3294_v19  ;;  %v3371_v33 = vsel %vm741_vm2, %v7910_v23, 0.0 }
 0x33c   :  { %v7915_v48 = vpop.eup %6864  ;;  %v3300_v31 = vmul.f32 1.442695, %v3237_v38  ;;  %6878 = vrcp.f32 %v3304_v27  ;;  %3372 = vadd.xlane.f32.xlu0 %v3371_v33  ;;  %v8250_v38 = vmov 0.0  }
 0x33d   :  { %v3368_v47 = vsel %vm741_vm2, %v7915_v48, 0.0  ;;  %v7962_v33 = vpop.permute.xlu0 %725 }
 0x33e   :  { %v7919_v54 = vpop.eup %6866  ;;  %6880 = vpow2.f32 %v3300_v31  ;;  %3369 = vadd.xlane.f32.xlu1 %v3368_v47  ;;  %v3202_v49 = vpop.xlane.xlu1 %3201 }
 0x33f   :  { %v3236_v60 = vsub.f32 %v7779_v10, %v3202_v49  ;;  %v3377_v2 = vsel %vm741_vm2, %v7919_v54, 0.0 }
 0x340   :  { %v7924_v62 = vpop.eup %6868  ;;  %3378 = vadd.xlane.f32.xlu0 %v3377_v2 }
 0x341   :  { %v3298_v22 = vmul.f32 1.442695, %v3236_v60  ;;  %v3374_v8 = vsel %vm741_vm2, %v7924_v62, 0.0 }
 0x342   :  { %v7928_v1 = vpop.eup %6870  ;;  %3375 = vadd.xlane.f32.xlu1 %v3374_v8  ;;  %v7964_v31 = vpop.permute.xlu1 %727 }
 0x343   :  { %6882 = vpow2.f32 %v3298_v22  ;;  %v3383_v4 = vsel %vm741_vm2, %v7928_v1, 0.0 }
 0x344   :  { %v7932_v36 = vpop.eup %6872  ;;  %3384 = vadd.xlane.f32.xlu0 %v3383_v4 }
 0x345   :  { %v3380_v10 = vsel %vm741_vm2, %v7932_v36, 0.0 }
 0x346   :  { %v7936_v24 = vpop.eup %6874  ;;  %3381 = vadd.xlane.f32.xlu1 %v3380_v10 }
 0x347   :  { %v3389_v17 = vsel %vm741_vm2, %v7936_v24, 0.0 }
 0x348   :  { %v7940_v18 = vpop.eup %6876  ;;  %3390 = vadd.xlane.f32.xlu0 %v3389_v17 }
 0x349   :  { %v6879_v16 = vpop.eup %6878  ;;  %v3386_v45 = vsel %vm741_vm2, %v7940_v18, 0.0 }
 0x34a   :  { %3387 = vadd.xlane.f32.xlu1 %v3386_v45  ;;  %v3430_v19 = vmul.f32 %v6879_v16, %v7771_v43 }
 0x34b   :  { %v7945_v25 = vpop.eup %6880 }
 0x34c   :  { %6616 = vmatmul.mubr.msk.f32.vlgmr.msra.gmra.mxu0 %vm741_vm2, %v3430_v19  ;;  %v3395_v29 = vsel %vm741_vm2, %v7945_v25, 0.0 }
 0x34d   :  { %6624 = vmatpush3.msra.mxu0 %v7420_v56  ;;  %3396 = vadd.xlane.f32.xlu0 %v3395_v29 }
 0x34e   :  { %6625 = vmatprep.mubr.msk.f32.mxu0 %vm7126_vm1, %v8250_v38  ;;  %6633 = vmatprep.subr.mxu0 %v8250_v38 }
 0x350   :  { %v7954_v27 = vpop.eup %6882 }
 0x351   :  { %v3392_v43 = vsel %vm741_vm2, %v7954_v27, 0.0 }
 0x352   :  { %3393 = vadd.xlane.f32.xlu1 %v3392_v43 }
 0x363   :  { %729 = vrot.lane.b32.xlu0 %v7456_v0, %s7129_s17  ;;  %731 = vrot.lane.b32.xlu1 %v7440_v59, %s7129_s17 }
 0x36e   :  { %v3307_v56 = vpop.xlane.xlu0 %3306 }
 0x36f   :  { %6884 = vrcp.f32 %v3307_v56 }
 0x372   :  { %v3313_v47 = vpop.xlane.xlu0 %3312 }
 0x373   :  { %6886 = vrcp.f32 %v3313_v47  ;;  %v3310_v49 = vpop.xlane.xlu1 %3309 }
 0x374   :  { %6888 = vrcp.f32 %v3310_v49 }
 0x376   :  { %v3319_v60 = vpop.xlane.xlu0 %3318 }
 0x377   :  { %6890 = vrcp.f32 %v3319_v60  ;;  %v3316_v2 = vpop.xlane.xlu1 %3315 }
 0x378   :  { %6892 = vrcp.f32 %v3316_v2 }
 0x37a   :  { %v3325_v22 = vpop.xlane.xlu0 %3324 }
 0x37b   :  { %6894 = vrcp.f32 %v3325_v22  ;;  %v3322_v8 = vpop.xlane.xlu1 %3321 }
 0x37c   :  { %v6885_v4 = vpop.eup %6884  ;;  %6896 = vrcp.f32 %v3322_v8 }
 0x37d   :  { %v3431_v10 = vmul.f32 %v6885_v4, %v7804_v39 }
 0x37f   :  { %6621 = vmatmul.mubr.msk.f32.vlgmr.msra.gmra.mxu1 %vm741_vm2, %v3431_v10 }
 0x380   :  { %v6887_v17 = vpop.eup %6886  ;;  %6629 = vmatpush3.msra.mxu1 %v7415_v55  ;;  %6630 = vmatprep.mubr.msk.f32.mxu1 %vm7126_vm1, %v8250_v38 }
 0x381   :  { %v6889_v16 = vpop.eup %6888  ;;  %6638 = vmatprep.subr.mxu1 %v8250_v38  ;;  %v3433_v45 = vmul.f32 %v6887_v17, %v7808_v53 }
 0x382   :  { %v3432_v19 = vmul.f32 %v6889_v16, %v7810_v6 }
 0x383   :  { %6631 = vmatmul.mubr.msk.f32.vlgmr.msra.gmra.mxu1 %vm741_vm2, %v3433_v45 }
 0x384   :  { %v6891_v29 = vpop.eup %6890  ;;  %6639 = vmatpush3.msra.mxu1 %v7426_v57  ;;  %6626 = vmatmul.mubr.msk.f32.vlgmr.msra.gmra.mxu0 %vm741_vm2, %v3432_v19 }
 0x385   :  { %v6893_v39 = vpop.eup %6892  ;;  %6634 = vmatpush3.msra.mxu0 %v7432_v58  ;;  %6640 = vmatprep.mubr.msk.f32.mxu1 %vm7126_vm1, %v8250_v38  ;;  %v3435_v55 = vmul.f32 %v6891_v29, %v7814_v63 }
 0x386   :  { %6648 = vmatprep.subr.mxu1 %v8250_v38  ;;  %6635 = vmatprep.mubr.msk.f32.mxu0 %vm7126_vm1, %v8250_v38  ;;  %v3434_v53 = vmul.f32 %v6893_v39, %v7818_v30 }
 0x387   :  { %6641 = vmatmul.mubr.msk.f32.vlgmr.msra.gmra.mxu1 %vm741_vm2, %v3435_v55  ;;  %6643 = vmatprep.subr.mxu0 %v8250_v38  ;;  %v8251_v55 = vld [vmem:[#allocation20_spill] sm:$0xff] }
 0x388   :  { %v6895_v57 = vpop.eup %6894  ;;  %6649 = vmatpush3.msra.mxu1 %v7440_v59  ;;  %6636 = vmatmul.mubr.msk.f32.vlgmr.msra.gmra.mxu0 %vm741_vm2, %v3434_v53 }
 0x389   :  { %v6897_v58 = vpop.eup %6896  ;;  %6644 = vmatpush3.msra.mxu0 %v7456_v0  ;;  %6650 = vmatprep.mubr.msk.f32.mxu1 %vm7126_vm1, %v8250_v38  ;;  %v3437_v6 = vmul.f32 %v6895_v57, %v7822_v42  ;;  %v8252_v57 = vld [vmem:[#allocation24_spill] sm:$0xff] }
 0x38a   :  { %6658 = vmatprep.subr.mxu1 %v8250_v38  ;;  %6645 = vmatprep.mubr.msk.f32.mxu0 %vm7126_vm1, %v8250_v38  ;;  %v3436_v63 = vmul.f32 %v6897_v58, %v7826_v50 }
 0x38b   :  { %6651 = vmatmul.mubr.msk.f32.vlgmr.msra.gmra.mxu1 %vm741_vm2, %v3437_v6  ;;  %6653 = vmatprep.subr.mxu0 %v8250_v38 }
 0x38c   :  { %6659 = vmatpush3.msra.mxu1 %v7652_v12  ;;  %6646 = vmatmul.mubr.msk.f32.vlgmr.msra.gmra.mxu0 %vm741_vm2, %v3436_v63  ;;  %v8253_v63 = vld [vmem:[#allocation26_spill] sm:$0xff] }
 0x38d   :  { %6654 = vmatpush3.msra.mxu0 %v7688_v35  ;;  %6660 = vmatprep.mubr.msk.f32.mxu1 %vm7126_vm1, %v8250_v38 }
 0x38e   :  { %6668 = vmatprep.subr.mxu1 %v8250_v38  ;;  %6655 = vmatprep.mubr.msk.f32.mxu0 %vm7126_vm1, %v8250_v38 }
 0x38f   :  { %6663 = vmatprep.subr.mxu0 %v8250_v38 }
 0x39b   :  { %v3331_v59 = vpop.xlane.xlu0 %3330 }
 0x39c   :  { %6898 = vrcp.f32 %v3331_v59 }
 0x39f   :  { %v3328_v0 = vpop.xlane.xlu1 %3327 }
 0x3a0   :  { %6900 = vrcp.f32 %v3328_v0 }
 0x3a5   :  { %v3337_v30 = vpop.xlane.xlu0 %3336 }
 0x3a6   :  { %6902 = vrcp.f32 %v3337_v30  ;;  %v8254_v30 = vld [vmem:[#allocation25_spill] sm:$0xff] }
 0x3a7   :  { %v3334_v12 = vpop.xlane.xlu1 %3333 }
 0x3a8   :  { %6904 = vrcp.f32 %v3334_v12 }
 0x3a9   :  { %v6899_v42 = vpop.eup %6898 }
 0x3aa   :  { %v3439_v35 = vmul.f32 %v6899_v42, %v7836_v46 }
 0x3ac   :  { %6661 = vmatmul.mubr.msk.f32.vlgmr.msra.gmra.mxu1 %vm741_vm2, %v3439_v35  ;;  %v8255_v35 = vld [vmem:[#allocation27_spill] sm:$0xff] }
 0x3ad   :  { %v6901_v50 = vpop.eup %6900  ;;  %6669 = vmatpush3.msra.mxu1 %v7654_v13  ;;  %v3343_v43 = vpop.xlane.xlu0 %3342  ;;  %6670 = vmatprep.mubr.msk.f32.mxu1 %vm7126_vm1, %v8250_v38 }
 0x3ae   :  { %6906 = vrcp.f32 %v3343_v43  ;;  %v3438_v56 = vmul.f32 %v6901_v50, %v7842_v51  ;;  %6678 = vmatprep.subr.mxu1 %v8250_v38 }
 0x3af   :  { %v3340_v47 = vpop.xlane.xlu1 %3339 }
 0x3b0   :  { %6908 = vrcp.f32 %v3340_v47  ;;  %6656 = vmatmul.mubr.msk.f32.vlgmr.msra.gmra.mxu0 %vm741_vm2, %v3438_v56  ;;  %v8256_v56 = vld [vmem:[#allocation21_spill] sm:$0xff] }
 0x3b1   :  { %6664 = vmatpush3.msra.mxu0 %v7696_v41  ;;  %6665 = vmatprep.mubr.msk.f32.mxu0 %vm7126_vm1, %v8250_v38 }
 0x3b2   :  { %6673 = vmatprep.subr.mxu0 %v8250_v38 }
 0x3b3   :  { %v6903_v13 = vpop.eup %6902 }
 0x3b4   :  { %v3441_v46 = vmul.f32 %v6903_v13, %v7847_v44 }
 0x3b5   :  { %v3349_v49 = vpop.xlane.xlu0 %3348  ;;  %v6905_v60 = vpop.eup %6904 }
 0x3b6   :  { %6910 = vrcp.f32 %v3349_v49  ;;  %6671 = vmatmul.mubr.msk.f32.vlgmr.msra.gmra.mxu1 %vm741_vm2, %v3441_v46  ;;  %v3440_v2 = vmul.f32 %v6905_v60, %v7852_v52  ;;  %v8257_v46 = vld [vmem:[#allocation28_spill] sm:$0xff]  ;;  %v8258_v60 = vld [vmem:[#allocation22_spill] sm:$0xff] }
 0x3b7   :  { %6679 = vmatpush3.msra.mxu1 %v7656_v14  ;;  %v3346_v51 = vpop.xlane.xlu1 %3345  ;;  %6680 = vmatprep.mubr.msk.f32.mxu1 %vm7126_vm1, %v8250_v38 }
 0x3b8   :  { %6912 = vrcp.f32 %v3346_v51  ;;  %6688 = vmatprep.subr.mxu1 %v8250_v38  ;;  %6666 = vmatmul.mubr.msk.f32.vlgmr.msra.gmra.mxu0 %vm741_vm2, %v3440_v2  ;;  %v8259_v2 = vld [vmem:[#allocation29_spill] sm:$0xff] }
 0x3b9   :  { %v3355_v41 = vpop.xlane.xlu0 %3354  ;;  %6674 = vmatpush3.msra.mxu0 %v7712_v61  ;;  %6675 = vmatprep.mubr.msk.f32.mxu0 %vm7126_vm1, %v8250_v38 }
 0x3ba   :  { %6914 = vrcp.f32 %v3355_v41  ;;  %6683 = vmatprep.subr.mxu0 %v8250_v38 }
 0x3bb   :  { %v6907_v44 = vpop.eup %6906  ;;  %v3352_v14 = vpop.xlane.xlu1 %3351 }
 0x3bc   :  { %6916 = vrcp.f32 %v3352_v14  ;;  %v3443_v52 = vmul.f32 %v6907_v44, %v7859_v37  ;;  %v8260_v14 = vld [vmem:[#allocation23_spill] sm:$0xff] }
 0x3bd   :  { %v6909_v22 = vpop.eup %6908  ;;  %v3361_v8 = vpop.xlane.xlu0 %3360 }
 0x3be   :  { %6918 = vrcp.f32 %v3361_v8  ;;  %6681 = vmatmul.mubr.msk.f32.vlgmr.msra.gmra.mxu1 %vm741_vm2, %v3443_v52  ;;  %v3442_v4 = vmul.f32 %v6909_v22, %v7864_v11 }
 0x3bf   :  { %6689 = vmatpush3.msra.mxu1 %v7658_v15  ;;  %v3358_v61 = vpop.xlane.xlu1 %3357  ;;  %6690 = vmatprep.mubr.msk.f32.mxu1 %vm7126_vm1, %v8250_v38 }
 0x3c0   :  { %6920 = vrcp.f32 %v3358_v61  ;;  %6676 = vmatmul.mubr.msk.f32.vlgmr.msra.gmra.mxu0 %vm741_vm2, %v3442_v4  ;;  %6698 = vmatprep.subr.mxu1 %v8250_v38 }
 0x3c1   :  { %6684 = vmatpush3.msra.mxu0 %v7787_v32  ;;  %v3367_v37 = vpop.xlane.xlu0 %3366  ;;  %6685 = vmatprep.mubr.msk.f32.mxu0 %vm7126_vm1, %v8250_v38 }
 0x3c2   :  { %6922 = vrcp.f32 %v3367_v37  ;;  %6693 = vmatprep.subr.mxu0 %v8250_v38 }
 0x3c3   :  { %v6911_v11 = vpop.eup %6910  ;;  %v3364_v15 = vpop.xlane.xlu1 %3363 }
 0x3c4   :  { %6924 = vrcp.f32 %v3364_v15  ;;  %v3445_v10 = vmul.f32 %v6911_v11, %v7871_v9 }
 0x3c5   :  { %v6913_v17 = vpop.eup %6912  ;;  %v3373_v16 = vpop.xlane.xlu0 %3372 }
 0x3c6   :  { %6926 = vrcp.f32 %v3373_v16  ;;  %6691 = vmatmul.mubr.msk.f32.vlgmr.msra.gmra.mxu1 %vm741_vm2, %v3445_v10  ;;  %v3444_v45 = vmul.f32 %v6913_v17, %v7876_v7 }
 0x3c7   :  { %v6915_v32 = vpop.eup %6914  ;;  %6699 = vmatpush3.msra.mxu1 %v7666_v20  ;;  %v3370_v19 = vpop.xlane.xlu1 %3369  ;;  %6700 = vmatprep.mubr.msk.f32.mxu1 %vm7126_vm1, %v8250_v38 }
 0x3c8   :  { %6928 = vrcp.f32 %v3370_v19  ;;  %6686 = vmatmul.mubr.msk.f32.vlgmr.msra.gmra.mxu0 %vm741_vm2, %v3444_v45  ;;  %6708 = vmatprep.subr.mxu1 %v8250_v38  ;;  %v3447_v9 = vmul.f32 %v6915_v32, %v7881_v28 }
 0x3c9   :  { %v6917_v29 = vpop.eup %6916  ;;  %6694 = vmatpush3.msra.mxu0 %v7727_v21  ;;  %v3379_v39 = vpop.xlane.xlu0 %3378  ;;  %6695 = vmatprep.mubr.msk.f32.mxu0 %vm7126_vm1, %v8250_v38 }
 0x3ca   :  { %6930 = vrcp.f32 %v3379_v39  ;;  %6701 = vmatmul.mubr.msk.f32.vlgmr.msra.gmra.mxu1 %vm741_vm2, %v3447_v9  ;;  %6703 = vmatprep.subr.mxu0 %v8250_v38  ;;  %v3446_v20 = vmul.f32 %v6917_v29, %v7886_v5 }
 0x3cb   :  { %v6919_v7 = vpop.eup %6918  ;;  %6709 = vmatpush3.msra.mxu1 %v8251_v55  ;;  %v3376_v53 = vpop.xlane.xlu1 %3375  ;;  %6710 = vmatprep.mubr.msk.f32.mxu1 %vm7126_vm1, %v8250_v38 }
 0x3cc   :  { %6932 = vrcp.f32 %v3376_v53  ;;  %6696 = vmatmul.mubr.msk.f32.vlgmr.msra.gmra.mxu0 %vm741_vm2, %v3446_v20  ;;  %6718 = vmatprep.subr.mxu1 %v8250_v38  ;;  %v3449_v21 = vmul.f32 %v6919_v7, %v7891_v3 }
 0x3cd   :  { %v6921_v28 = vpop.eup %6920  ;;  %6704 = vmatpush3.msra.mxu0 %v8252_v57  ;;  %v3385_v58 = vpop.xlane.xlu0 %3384  ;;  %6705 = vmatprep.mubr.msk.f32.mxu0 %vm7126_vm1, %v8250_v38 }
 0x3ce   :  { %6934 = vrcp.f32 %v3385_v58  ;;  %6711 = vmatmul.mubr.msk.f32.vlgmr.msra.gmra.mxu1 %vm741_vm2, %v3449_v21  ;;  %6713 = vmatprep.subr.mxu0 %v8250_v38  ;;  %v3448_v5 = vmul.f32 %v6921_v28, %v7896_v34 }
 0x3cf   :  { %v6923_v6 = vpop.eup %6922  ;;  %6719 = vmatpush3.msra.mxu1 %v8253_v63  ;;  %v3382_v59 = vpop.xlane.xlu1 %3381  ;;  %6720 = vmatprep.mubr.msk.f32.mxu1 %vm7126_vm1, %v8250_v38 }
 0x3d0   :  { %6936 = vrcp.f32 %v3382_v59  ;;  %6706 = vmatmul.mubr.msk.f32.vlgmr.msra.gmra.mxu0 %vm741_vm2, %v3448_v5  ;;  %6728 = vmatprep.subr.mxu1 %v8250_v38  ;;  %v3451_v3 = vmul.f32 %v6923_v6, %v7901_v40 }
 0x3d1   :  { %v6925_v0 = vpop.eup %6924  ;;  %6714 = vmatpush3.msra.mxu0 %v8254_v30  ;;  %v3391_v12 = vpop.xlane.xlu0 %3390  ;;  %6715 = vmatprep.mubr.msk.f32.mxu0 %vm7126_vm1, %v8250_v38 }
 0x3d2   :  { %6938 = vrcp.f32 %v3391_v12  ;;  %6721 = vmatmul.mubr.msk.f32.vlgmr.msra.gmra.mxu1 %vm741_vm2, %v3451_v3  ;;  %6723 = vmatprep.subr.mxu0 %v8250_v38  ;;  %v3450_v34 = vmul.f32 %v6925_v0, %v7906_v26 }
 0x3d3   :  { %v6927_v42 = vpop.eup %6926  ;;  %6729 = vmatpush3.msra.mxu1 %v8255_v35  ;;  %v3388_v50 = vpop.xlane.xlu1 %3387  ;;  %6730 = vmatprep.mubr.msk.f32.mxu1 %vm7126_vm1, %v8250_v38 }
 0x3d4   :  { %6940 = vrcp.f32 %v3388_v50  ;;  %6716 = vmatmul.mubr.msk.f32.vlgmr.msra.gmra.mxu0 %vm741_vm2, %v3450_v34  ;;  %6738 = vmatprep.subr.mxu1 %v8250_v38  ;;  %v3453_v40 = vmul.f32 %v6927_v42, %v7910_v23  ;;  %v5923_v42 = vld [vmem:[#allocation13 + $0x18] sm:$0xff] }
 0x3d5   :  { %v6929_v43 = vpop.eup %6928  ;;  %6724 = vmatpush3.msra.mxu0 %v8256_v56  ;;  %6725 = vmatprep.mubr.msk.f32.mxu0 %vm7126_vm1, %v8250_v38 }
 0x3d6   :  { %6731 = vmatmul.mubr.msk.f32.vlgmr.msra.gmra.mxu1 %vm741_vm2, %v3453_v40  ;;  %v3397_v26 = vpop.xlane.xlu0 %3396  ;;  %6733 = vmatprep.subr.mxu0 %v8250_v38  ;;  %v3452_v47 = vmul.f32 %v6929_v43, %v7915_v48  ;;  %v5922_v40 = vld [vmem:[#allocation13 + $0x10] sm:$0xff] }
 0x3d7   :  { %v6931_v13 = vpop.eup %6930  ;;  %6739 = vmatpush3.msra.mxu1 %v8257_v46  ;;  %6942 = vrcp.f32 %v3397_v26  ;;  %6740 = vmatprep.mubr.msk.f32.mxu1 %vm7126_vm1, %v8250_v38  ;;  %v5921_v26 = vld [vmem:[#allocation13 + $0x8] sm:$0xff]  ;;  %v5920_v46 = vld [vmem:[#allocation13] sm:$0xff] }
 0x3d8   :  { %6726 = vmatmul.mubr.msk.f32.vlgmr.msra.gmra.mxu0 %vm741_vm2, %v3452_v47  ;;  %6748 = vmatprep.subr.mxu1 %v8250_v38  ;;  %v3455_v23 = vmul.f32 %v6931_v13, %v7919_v54 }
 0x3d9   :  { %v6933_v49 = vpop.eup %6932  ;;  %6734 = vmatpush3.msra.mxu0 %v8258_v60  ;;  %6735 = vmatprep.mubr.msk.f32.mxu0 %vm7126_vm1, %v8250_v38 }
 0x3da   :  { %6741 = vmatmul.mubr.msk.f32.vlgmr.msra.gmra.mxu1 %vm741_vm2, %v3455_v23  ;;  %6743 = vmatprep.subr.mxu0 %v8250_v38  ;;  %v3454_v48 = vmul.f32 %v6933_v49, %v7924_v62  ;;  %v730_v4 = vpop.permute.xlu0 %729 }
 0x3db   :  { %v6935_v51 = vpop.eup %6934  ;;  %6749 = vmatpush3.msra.mxu1 %v8259_v2  ;;  %v3394_v41 = vpop.xlane.xlu1 %3393  ;;  %6750 = vmatprep.mubr.msk.f32.mxu1 %vm7126_vm1, %v8250_v38 }
 0x3dc   :  { %6944 = vrcp.f32 %v3394_v41  ;;  %6736 = vmatmul.mubr.msk.f32.vlgmr.msra.gmra.mxu0 %vm741_vm2, %v3454_v48  ;;  %6758 = vmatprep.subr.mxu1 %v8250_v38  ;;  %v3457_v54 = vmul.f32 %v6935_v51, %v7928_v1 }
 0x3dd   :  { %v6937_v44 = vpop.eup %6936  ;;  %6744 = vmatpush3.msra.mxu0 %v8260_v14  ;;  %6745 = vmatprep.mubr.msk.f32.mxu0 %vm7126_vm1, %v8250_v38 }
 0x3de   :  { %6751 = vmatmul.mubr.msk.f32.vlgmr.msra.gmra.mxu1 %vm741_vm2, %v3457_v54  ;;  %6753 = vmatprep.subr.mxu0 %v8250_v38  ;;  %v3456_v62 = vmul.f32 %v6937_v44, %v7932_v36 }
 0x3df   :  { %v6939_v52 = vpop.eup %6938  ;;  %6759 = vmatpush3.msra.mxu1 %v7964_v31  ;;  %6760 = vmatprep.mubr.msk.f32.mxu1 %vm7126_vm1, %v8250_v38  ;;  %v732_v8 = vpop.permute.xlu1 %731 }
 0x3e0   :  { %6746 = vmatmul.mubr.msk.f32.vlgmr.msra.gmra.mxu0 %vm741_vm2, %v3456_v62  ;;  %6768 = vmatprep.subr.mxu1 %v8250_v38  ;;  %v3459_v1 = vmul.f32 %v6939_v52, %v7936_v24 }
 0x3e1   :  { %v6941_v22 = vpop.eup %6940  ;;  %6754 = vmatpush3.msra.mxu0 %v7962_v33  ;;  %6755 = vmatprep.mubr.msk.f32.mxu0 %vm7126_vm1, %v8250_v38 }
 0x3e2   :  { %6761 = vmatmul.mubr.msk.f32.vlgmr.msra.gmra.mxu1 %vm741_vm2, %v3459_v1  ;;  %6763 = vmatprep.subr.mxu0 %v8250_v38  ;;  %v3458_v36 = vmul.f32 %v6941_v22, %v7940_v18 }
 0x3e3   :  { %6769 = vmatpush3.msra.mxu1 %v732_v8  ;;  %6770 = vmatprep.mubr.msk.f32.mxu1 %vm7126_vm1, %v8250_v38 }
 0x3e4   :  { %v6943_v31 = vpop.eup %6942  ;;  %6756 = vmatmul.mubr.msk.f32.vlgmr.msra.gmra.mxu0 %vm741_vm2, %v3458_v36 }
 0x3e5   :  { %6764 = vmatpush3.msra.mxu0 %v730_v4  ;;  %v3461_v24 = vmul.f32 %v6943_v31, %v7945_v25  ;;  %6765 = vmatprep.mubr.msk.f32.mxu0 %vm7126_vm1, %v8250_v38 }
 0x3e6   :  { %6773 = vmatprep.subr.mxu0 %v5923_v42 }
 0x3e7   :  { %6771 = vmatmul.mubr.msk.f32.vlgmr.msra.gmra.mxu1 %vm741_vm2, %v3461_v24 }
 0x3e9   :  { %v6945_v33 = vpop.eup %6944 }
 0x3ea   :  { %v3460_v61 = vmul.f32 %v6945_v33, %v7954_v27 }
 0x3ec   :  { %6766 = vmatmul.mubr.msk.f32.vlgmr.msra.gmra.mxu0 %vm741_vm2, %v3460_v61 }
 0x3ed   :  { %6774 = vmatpush3.msra.mxu0 %v5923_v42 }
 0x3ee   :  { %6775 = vmatprep.subr.mxu0 %v5922_v40 }
 0x3ef   :  { %6776 = vmatpush3.msra.mxu0 %v5922_v40 }
 0x3f0   :  { %6777 = vmatprep.subr.mxu0 %v5921_v26 }
 0x3f1   :  { %6778 = vmatpush3.msra.mxu0 %v5921_v26 }
 0x3f2   :  { %6779 = vmatprep.subr.mxu0 %v5920_v46 }
 0x3f3   :  { %6780 = vmatpush3.msra.mxu0 %v5920_v46 }
 0x40c   :  { %v8140_v18 = vpop.f32.mrf.mxu0 }
 0x40e   :  { %v6617_v37 = vpop.f32.mrf.mxu0 }
 0x43f   :  { %v8142_v11 = vpop.f32.mrf.mxu1 }
 0x441   :  { %v6622_v15 = vpop.f32.mrf.mxu1 }
 0x443   :  { %v8144_v10 = vpop.f32.mrf.mxu1 }
 0x444   :  { %v8146_v17 = vpop.f32.mrf.mxu0 }
 0x445   :  { %v6632_v25 = vpop.f32.mrf.mxu1 }
 0x446   :  { %v6627_v16 = vpop.f32.mrf.mxu0 }
 0x447   :  { %v8148_v38 = vpop.f32.mrf.mxu1 }
 0x448   :  { %v8150_v45 = vpop.f32.mrf.mxu0 }
 0x449   :  { %v6642_v32 = vpop.f32.mrf.mxu1 }
 0x44a   :  { %v6637_v27 = vpop.f32.mrf.mxu0 }
 0x44b   :  { %v8152_v19 = vpop.f32.mrf.mxu1 }
 0x44c   :  { %v8154_v9 = vpop.f32.mrf.mxu0 }
 0x44d   :  { %v6652_v29 = vpop.f32.mrf.mxu1 }
 0x44e   :  { %v6647_v39 = vpop.f32.mrf.mxu0 }
 0x46c   :  { %v4188_v20 = vpop.f32.mrf.mxu1 }
 0x46d   :  { %5808 = vrot.lane.b32.xlu1 %v4188_v20, %s7119_s11 }
 0x46e   :  { %v6662_v7 = vpop.f32.mrf.mxu1 }
 0x470   :  { %v4115_v55 = vpop.f32.mrf.mxu0 }
 0x471   :  { %5806 = vrot.lane.b32.xlu0 %v4115_v55, %s7119_s11 }
 0x472   :  { %v6657_v53 = vpop.f32.mrf.mxu0 }
 0x476   :  { %v4334_v21 = vpop.f32.mrf.mxu1 }
 0x477   :  { %5812 = vrot.lane.b32.xlu1 %v4334_v21, %s7119_s11 }
 0x478   :  { %v6672_v28 = vpop.f32.mrf.mxu1  ;;  %v4261_v57 = vpop.f32.mrf.mxu0 }
 0x479   :  { %5810 = vrot.lane.b32.xlu0 %v4261_v57, %s7119_s11 }
 0x47a   :  { %v6667_v58 = vpop.f32.mrf.mxu0 }
 0x47e   :  { %v4480_v5 = vpop.f32.mrf.mxu1 }
 0x47f   :  { %5816 = vrot.lane.b32.xlu1 %v4480_v5, %s7119_s11 }
 0x480   :  { %v4407_v6 = vpop.f32.mrf.mxu0  ;;  %v6682_v63 = vpop.f32.mrf.mxu1 }
 0x481   :  { %5814 = vrot.lane.b32.xlu0 %v4407_v6, %s7119_s11 }
 0x482   :  { %v6677_v59 = vpop.f32.mrf.mxu0 }
 0x486   :  { %v4626_v3 = vpop.f32.mrf.mxu1 }
 0x487   :  { %5820 = vrot.lane.b32.xlu1 %v4626_v3, %s7119_s11 }
 0x488   :  { %v4553_v0 = vpop.f32.mrf.mxu0  ;;  %v6692_v30 = vpop.f32.mrf.mxu1 }
 0x489   :  { %5818 = vrot.lane.b32.xlu0 %v4553_v0, %s7119_s11 }
 0x48a   :  { %v6687_v12 = vpop.f32.mrf.mxu0  ;;  %v4772_v34 = vpop.f32.mrf.mxu1 }
 0x48b   :  { %5840 = vrot.lane.b32.xlu1 %v4772_v34, %s7130_s18 }
 0x48c   :  { %v4699_v35 = vpop.f32.mrf.mxu0  ;;  %v6702_v50 = vpop.f32.mrf.mxu1 }
 0x48d   :  { %5838 = vrot.lane.b32.xlu0 %v4699_v35, %s7130_s18 }
 0x48e   :  { %v6697_v43 = vpop.f32.mrf.mxu0  ;;  %v4918_v56 = vpop.f32.mrf.mxu1 }
 0x48f   :  { %5844 = vrot.lane.b32.xlu1 %v4918_v56, %s7130_s18 }
 0x490   :  { %v4845_v47 = vpop.f32.mrf.mxu0  ;;  %v6712_v13 = vpop.f32.mrf.mxu1 }
 0x491   :  { %5842 = vrot.lane.b32.xlu0 %v4845_v47, %s7130_s18 }
 0x492   :  { %v6707_v23 = vpop.f32.mrf.mxu0  ;;  %v5064_v49 = vpop.f32.mrf.mxu1 }
 0x493   :  { %5848 = vrot.lane.b32.xlu1 %v5064_v49, %s7130_s18 }
 0x494   :  { %v4991_v60 = vpop.f32.mrf.mxu0  ;;  %v6722_v48 = vpop.f32.mrf.mxu1 }
 0x495   :  { %5846 = vrot.lane.b32.xlu0 %v4991_v60, %s7130_s18 }
 0x496   :  { %v6717_v51 = vpop.f32.mrf.mxu0  ;;  %v5210_v2 = vpop.f32.mrf.mxu1 }
 0x497   :  { %5852 = vrot.lane.b32.xlu1 %v5210_v2, %s7130_s18 }
 0x498   :  { %v5137_v41 = vpop.f32.mrf.mxu0  ;;  %v6732_v54 = vpop.f32.mrf.mxu1 }
 0x499   :  { %5850 = vrot.lane.b32.xlu0 %v5137_v41, %s7130_s18 }
 0x49a   :  { %v6727_v44 = vpop.f32.mrf.mxu0  ;;  %v5356_v14 = vpop.f32.mrf.mxu1 }
 0x49b   :  { %5872 = vrot.lane.b32.xlu1 %v5356_v14, %s7131_s19 }
 0x49c   :  { %v5283_v62 = vpop.f32.mrf.mxu0  ;;  %v6742_v52 = vpop.f32.mrf.mxu1 }
 0x49d   :  { %5870 = vrot.lane.b32.xlu0 %v5283_v62, %s7131_s19 }
 0x49e   :  { %v6737_v1 = vpop.f32.mrf.mxu0  ;;  %v5502_v22 = vpop.f32.mrf.mxu1 }
 0x49f   :  { %5876 = vrot.lane.b32.xlu1 %v5502_v22, %s7131_s19 }
 0x4a0   :  { %v5429_v8 = vpop.f32.mrf.mxu0  ;;  %v6752_v36 = vpop.f32.mrf.mxu1 }
 0x4a1   :  { %5874 = vrot.lane.b32.xlu0 %v5429_v8, %s7131_s19 }
 0x4a2   :  { %v6747_v31 = vpop.f32.mrf.mxu0  ;;  %v5648_v4 = vpop.f32.mrf.mxu1 }
 0x4a3   :  { %5880 = vrot.lane.b32.xlu1 %v5648_v4, %s7131_s19 }
 0x4a4   :  { %v5575_v24 = vpop.f32.mrf.mxu0  ;;  %v6762_v33 = vpop.f32.mrf.mxu1 }
 0x4a5   :  { %5878 = vrot.lane.b32.xlu0 %v5575_v24, %s7131_s19 }
 0x4a6   :  { %v6757_v61 = vpop.f32.mrf.mxu0 }
 0x4a7   :  { %v5794_v37 = vpop.f32.mrf.mxu1 }
 0x4a8   :  { %5884 = vrot.lane.b32.xlu1 %v5794_v37, %s7131_s19 }
 0x4a9   :  { %v6772_v15 = vpop.f32.mrf.mxu1 }
 0x4ac   :  { %v5721_v25 = vpop.f32.mrf.mxu0 }
 0x4ad   :  { %5882 = vrot.lane.b32.xlu0 %v5721_v25, %s7131_s19 }
 0x4ae   :  { %v6767_v16 = vpop.f32.mrf.mxu0 }
 0x4df   :  { %v5809_v32 = vpop.permute.xlu1 %5808 }
 0x4e0   :  { %v5895_v30 = vsel %vm741_vm2, %v8142_v11, %v5809_v32 }
 0x4e3   :  { %v5807_v27 = vpop.permute.xlu0 %5806 }
 0x4e4   :  { %v5894_v0 = vsel %vm741_vm2, %v8140_v18, %v5807_v27 }
 0x4e9   :  { %v5813_v29 = vpop.permute.xlu1 %5812 }
 0x4ea   :  { %v5897_v18 = vsel %vm741_vm2, %v8144_v10, %v5813_v29 }
 0x4eb   :  { %v5811_v39 = vpop.permute.xlu0 %5810 }
 0x4ec   :  { %v5896_v43 = vsel %vm741_vm2, %v8146_v17, %v5811_v39 }
 0x4f1   :  { %v5817_v20 = vpop.permute.xlu1 %5816 }
 0x4f2   :  { %v5899_v10 = vsel %vm741_vm2, %v8148_v38, %v5817_v20 }
 0x4f3   :  { %v5815_v7 = vpop.permute.xlu0 %5814 }
 0x4f4   :  { %v5898_v46 = vsel %vm741_vm2, %v8150_v45, %v5815_v7 }
 0x4f9   :  { %v5821_v55 = vpop.permute.xlu1 %5820 }
 0x4fa   :  { %v5901_v38 = vsel %vm741_vm2, %v8152_v19, %v5821_v55 }
 0x4fb   :  { %v5819_v53 = vpop.permute.xlu0 %5818 }
 0x4fc   :  { %v5900_v45 = vsel %vm741_vm2, %v8154_v9, %v5819_v53  ;;  %v6208_v9 = vld [vmem:[%s8236_s7] ss:$0 sm:$0xff]  ;;  %s7132_s7 = smov [#allocation14]  }
 0x4fd   :  { %v5841_v21 = vpop.permute.xlu1 %5840  ;;  %s6073_s21 = sshll.u32 %s7132_s7, 4  ;;  %s6074_s21 = int_to_ptr.vmem [resolvable:$true] %s6073_s21 }
 0x4fe   :  { %v5904_v42 = vsel %vm5902_vm3, %v5895_v30, %v5841_v21  ;;  %s7086_s22 = scalar_lea.vmem %s6074_s21, 1024  ;;  %p7091_p8 = scmp.lt.s32.totalorder %s6074_s21, %s6074_s21 }
 0x4ff   :  { %v5839_v28 = vpop.permute.xlu0 %5838  ;;  %p7087_p7 = scmp.ne.s32.totalorder %s6074_s21, %s7086_s22  ;;  %p7092_p9 = scmp.lt.s32.totalorder %s7086_s22, %s7086_s22 }
 0x500   :  { %v5903_v12 = vsel %vm5902_vm3, %v5894_v0, %v5839_v28 }
 0x501   :  { %v5845_v57 = vpop.permute.xlu1 %5844  ;;  %p7093_p10 = por %p7092_p9, %p7091_p8 }
 0x502   :  { %v5906_v26 = vsel %vm5902_vm3, %v5897_v18, %v5845_v57 }
 0x503   :  { %v5843_v58 = vpop.permute.xlu0 %5842  ;;  %p7094_p11 = pnand %p7093_p10, %p7087_p7 }
 0x504   :  { %v5905_v11 = vsel %vm5902_vm3, %v5896_v43, %v5843_v58 }
 0x505   :  { %v5849_v5 = vpop.permute.xlu1 %5848 }
 0x506   :  { %v5908_v60 = vsel %vm5902_vm3, %v5899_v10, %v5849_v5 }
 0x507   :  { %v5847_v6 = vpop.permute.xlu0 %5846 }
 0x508   :  { %v5907_v23 = vsel %vm5902_vm3, %v5898_v46, %v5847_v6 }
 0x509   :  { %v5853_v63 = vpop.permute.xlu1 %5852 }
 0x50a   :  { %v5910_v44 = vsel %vm5902_vm3, %v5901_v38, %v5853_v63 }
 0x50b   :  { %v5851_v59 = vpop.permute.xlu0 %5850 }
 0x50c   :  { %v5909_v41 = vsel %vm5902_vm3, %v5900_v45, %v5851_v59 }
 0x50d   :  { %v5873_v3 = vpop.permute.xlu1 %5872 }
 0x50e   :  { %v5913_v50 = vsel %vm5911_vm4, %v5904_v42, %v5873_v3 }
 0x50f   :  { %v5871_v34 = vpop.permute.xlu0 %5870 }
 0x510   :  { %v5912_v35 = vsel %vm5911_vm4, %v5903_v12, %v5871_v34 }
 0x511   :  { %v5877_v40 = vpop.permute.xlu1 %5876  ;;  %6781 = vmatprep.mubr.msk.f32.mxu0 %vm137_vm0, %v5912_v35 }
 0x512   :  { %6782 = vmatmul.mubr.msk.f32.vlgmr.msra.gmra.mxu0 %vm137_vm0, %v5913_v50  ;;  %v5915_v13 = vsel %vm5911_vm4, %v5906_v26, %v5877_v40 }
 0x513   :  { %v5875_v56 = vpop.permute.xlu0 %5874 }
 0x514   :  { %v5914_v47 = vsel %vm5911_vm4, %v5905_v11, %v5875_v56 }
 0x515   :  { %6784 = vmatprep.mubr.msk.f32.mxu0 %vm137_vm0, %v5914_v47  ;;  %v5881_v17 = vpop.permute.xlu1 %5880 }
 0x516   :  { %6785 = vmatmul.mubr.msk.f32.gmra.mxu0 %vm137_vm0, %v5915_v13  ;;  %v5917_v51 = vsel %vm5911_vm4, %v5908_v60, %v5881_v17 }
 0x517   :  { %v5879_v49 = vpop.permute.xlu0 %5878 }
 0x518   :  { %v5916_v48 = vsel %vm5911_vm4, %v5907_v23, %v5879_v49 }
 0x519   :  { %6787 = vmatprep.mubr.msk.f32.mxu0 %vm137_vm0, %v5916_v48 }
 0x51a   :  { %6788 = vmatmul.mubr.msk.f32.gmra.mxu0 %vm137_vm0, %v5917_v51  ;;  %v5885_v2 = vpop.permute.xlu1 %5884 }
 0x51b   :  { %v5919_v62 = vsel %vm5911_vm4, %v5910_v44, %v5885_v2 }
 0x51f   :  { %v5883_v54 = vpop.permute.xlu0 %5882 }
 0x520   :  { %v5918_v14 = vsel %vm5911_vm4, %v5909_v41, %v5883_v54 }
 0x521   :  { %6790 = vmatprep.mubr.msk.f32.mxu0 %vm137_vm0, %v5918_v14 }
 0x522   :  { %6791 = vmatmul.mubr.msk.f32.gmra.mxu0 %vm137_vm0, %v5919_v62 }
 0x5d2   :  { %v6783_v52 = vpop.f32.mrf.mxu0 }
 0x5d3   :  { %v6027_v1 = vadd.f32 %v6783_v52, %v6208_v9 }
 0x5d4   :  { %v6021_v19 = vpop.f32.mrf.mxu0 }
 0x5d5   :  { %6061 = vst.msk [vmem:[#allocation14 + $0x8] sm:$0xff] %vm137_vm0, %v6027_v1  ;;  %v6022_v22 = vadd.f32 %v6208_v9, %v6021_v19 }
 0x5d6   :  { %v6786_v8 = vpop.f32.mrf.mxu0 }
 0x5d7   :  { %6060 = vst.msk [vmem:[#allocation14] sm:$0xff] %vm137_vm0, %v6022_v22  ;;  %v6037_v36 = vadd.f32 %v6786_v8, %v6208_v9 }
 0x5d8   :  { %v6031_v31 = vpop.f32.mrf.mxu0 }
 0x5d9   :  { %6063 = vst.msk [vmem:[#allocation14 + $0x18] sm:$0xff] %vm137_vm0, %v6037_v36  ;;  %v6032_v4 = vadd.f32 %v6208_v9, %v6031_v31 }
 0x5da   :  { %v6789_v24 = vpop.f32.mrf.mxu0 }
 0x5db   :  { %6062 = vst.msk [vmem:[#allocation14 + $0x10] sm:$0xff] %vm137_vm0, %v6032_v4  ;;  %v6047_v33 = vadd.f32 %v6789_v24, %v6208_v9 }
 0x5dc   :  { %v6041_v61 = vpop.f32.mrf.mxu0 }
 0x5dd   :  { %6065 = vst.msk [vmem:[#allocation14 + $0x28] sm:$0xff] %vm137_vm0, %v6047_v33  ;;  %v6042_v37 = vadd.f32 %v6208_v9, %v6041_v61 }
 0x5df   :  { %6064 = vst.msk [vmem:[#allocation14 + $0x20] sm:$0xff] %vm137_vm0, %v6042_v37 }
 0x5e2   :  { %v6792_v15 = vpop.f32.mrf.mxu0 }
 0x5e3   :  { %v6057_v25 = vadd.f32 %v6792_v15, %v6208_v9 }
 0x5e4   :  { %v6051_v16 = vpop.f32.mrf.mxu0 }
 0x5e5   :  { %6067 = vst.msk [vmem:[#allocation14 + $0x38] sm:$0xff] %vm137_vm0, %v6057_v25  ;;  %v6052_v32 = vadd.f32 %v6208_v9, %v6051_v16 }
 0x5e7   :  { %6066 = vst.msk [vmem:[#allocation14 + $0x30] sm:$0xff] %vm137_vm0, %v6052_v32 }
 0x5e8   :  { %7097 = shalt.err (!%p7094_p11)
}
 0x5e9   :  { %6079 = dma.vmem_to_hbm [thread:$0]  %s6074_s21, 1024, %s8237_s8, [#allocation4], %s7118_s10, %s7118_s10, %s7119_s11  }
 0x5ea   :  { %7114 = dma.done.wait [#allocation4], 1024  }
 0x5eb   :  { %7115 = vsyncadd [#allocation4], 4294966272 }
 0x5ec   :  { %6083 = vsyncpa [#allocation3], 1 }
 0x5ed   :  { %6084 = vsyncpa [#allocation6], 1 }
 0x5ee   :  { %6085 = vsyncpa [#allocation9], 1 }
 0x5ef   :  { %6086 = vsyncpa [#allocation12], 1 }
 0x5f0   :  { %6087 = vsyncpa [#allocation4], 1 }

</bundles_post_ra>
